<compile_context>
chip_gen: v6e
topology: v6e:2x2x1
jax: 0.10.0
libtpu: 0.0.40
codegen_flags: <defaults>
</compile_context>

<pallas_src>
import numpy as np
import jax
import jax.numpy as jnp
from jax.experimental import pallas as pl
from jax.experimental.pallas import tpu as pltpu

# ----------------------------- small config -----------------------------
B = 2               # batch
T = 4               # frames
C = 3               # channels
IMG = 16            # spatial size
PATCH = 8           # spatial patch
TUBELET = 2         # temporal tubelet
D = 128             # hidden size (lane-dense; real model D=384 = 3*128)
HEADS = 2           # attention heads
HEAD_DIM = D // HEADS
LAYERS = 2          # encoder layers (real model: 12)
FFN = 4 * D         # intermediate size
NT, NH, NW = T // TUBELET, IMG // PATCH, IMG // PATCH
N = NT * NH * NW    # tokens per video (= 8)
BN = B * N          # batch folded into matmul rows (= 16)
P = C * TUBELET * PATCH * PATCH  # flattened Conv3d receptive field (= 384)
EPS = 1e-12         # HF layer_norm_eps (LN statistics in f32)
SCALE = HEAD_DIM ** -0.5

# Toy config: all stacked layer weights (~0.9 MB bf16) fit in VMEM, so process every
# layer inside ONE grid step (resident weights).  At the real 12-layer config, set
# LAYER_BLOCK < LAYERS so the grid streams / double-buffers weight blocks per step.
LAYER_BLOCK = LAYERS
NUM_STEPS = LAYERS // LAYER_BLOCK
assert LAYERS % LAYER_BLOCK == 0

VEC_ROWS = 8        # packed per-layer LN/bias vectors (sublane-padded to 8 rows)
# packing: row 0 = [ln1w | ln1b | bq | bv], row 1 = [bo | ln2w | ln2b | b2], row 2 = b1


# ----------------------------- kernel helpers -----------------------------
def _layernorm(x, w, b):
    mu = jnp.mean(x, axis=-1, keepdims=True)
    var = jnp.mean(jnp.square(x - mu), axis=-1, keepdims=True)
    return (x - mu) * jax.lax.rsqrt(var + EPS) * w + b


def _split_heads(t):
    """(B*N, D) -> (HEADS*B, N, HEAD_DIM): heads-major leading batch axis for one
    batched dot_general over all heads and batch elements."""
    parts = [t[:, h * HEAD_DIM:(h + 1) * HEAD_DIM].reshape(B, N, HEAD_DIM)
             for h in range(HEADS)]
    return jnp.stack(parts, axis=0).reshape(HEADS * B, N, HEAD_DIM)


# ----------------------------- patch-embedding kernel -----------------------------
def embed_kernel(patches_ref, pw_ref, pb_ref, pos_ref, out_ref):
    """Tubelet/patch embedding (Conv3d stride==kernel as one matmul) + sinusoid table.
    Hoisted out of the layer loop so these buffers never sit in VMEM during encoding."""
    y = jnp.dot(patches_ref[...], pw_ref[...], preferred_element_type=jnp.float32)
    y = y + pb_ref[...]
    y = y.reshape(B, N, D) + pos_ref[...]        # position table broadcasts over batch
    out_ref[...] = y.reshape(BN, D)


# ----------------------------- fused encoder kernel -----------------------------
def encoder_kernel(x0_ref, wqkv_ref, wo_ref, w1_ref, w2_ref, vecs_ref, out_ref, x_scr):
    step = pl.program_id(0)

    @pl.when(step == 0)
    def _init():
        x_scr[...] = x0_ref[...]                 # embedded tokens, (B*N, D) f32

    x = x_scr[...]

    for l in range(LAYER_BLOCK):
        # ---- unpack the per-layer LN/bias vectors (single packed DMA per block) ----
        vec = vecs_ref[l]                                        # (VEC_ROWS, FFN) f32
        ln1w, ln1b = vec[0:1, 0:D],         vec[0:1, D:2 * D]
        bq, bv     = vec[0:1, 2 * D:3 * D], vec[0:1, 3 * D:4 * D]
        bo, ln2w   = vec[1:2, 0:D],         vec[1:2, D:2 * D]
        ln2b, b2   = vec[1:2, 2 * D:3 * D], vec[1:2, 3 * D:4 * D]
        b1         = vec[2:3, :]                                 # (1, FFN)

        # ---- attention block (pre-LN; VideoMAE: q/v bias, no k bias) ----
        h = _layernorm(x, ln1w, ln1b)                            # f32 statistics
        qkv = jnp.dot(h.astype(jnp.bfloat16), wqkv_ref[l],       # fused QKV, bf16 MXU
                      preferred_element_type=jnp.float32)        # (B*N, 3D) f32
        q = qkv[:, 0:D] + bq
        k = qkv[:, D:2 * D]
        v = qkv[:, 2 * D:3 * D] + bv

        # One batched dot_general over (HEADS*B) — no per-head masked stores/scratch.
        qh = _split_heads(q).astype(jnp.bfloat16)
        kh = _split_heads(k).astype(jnp.bfloat16)
        vh = _split_heads(v).astype(jnp.bfloat16)
        s = jnp.einsum('gnd,gmd->gnm', qh, kh,
                       preferred_element_type=jnp.float32) * SCALE
        s = s - jnp.max(s, axis=-1, keepdims=True)
        e = jnp.exp(s)
        a = e / jnp.sum(e, axis=-1, keepdims=True)               # exact softmax (f32)
        ctx = jnp.einsum('gnm,gmd->gnd', a.astype(jnp.bfloat16), vh,
                         preferred_element_type=jnp.float32)     # (HEADS*B, N, HEAD_DIM)
        ctx = ctx.reshape(HEADS, BN, HEAD_DIM)

        # Output projection as head-major partial sums: no lane-axis concatenate.
        attn = bo
        for hd in range(HEADS):
            attn = attn + jnp.dot(ctx[hd].astype(jnp.bfloat16), wo_ref[l, hd],
                                  preferred_element_type=jnp.float32)
        h1 = x + attn                                            # residual 1 (f32)

        # ---- MLP block (pre-LN) ----
        g = _layernorm(h1, ln2w, ln2b)
        m = jnp.dot(g.astype(jnp.bfloat16), w1_ref[l],
                    preferred_element_type=jnp.float32) + b1
        # TODO(synk): HF "gelu" is exact erf-GELU; tanh-approximate GELU kept for
        #             Mosaic-safe lowering.
        m = jax.nn.gelu(m, approximate=True)
        m = jnp.dot(m.astype(jnp.bfloat16), w2_ref[l],
                    preferred_element_type=jnp.float32) + b2
        x = h1 + m                                               # residual 2 (f32)

    x_scr[...] = x                                               # carry to next block

    # ---- epilogue: mean-pool over tokens == hidden_states[-1].mean(1) ----
    @pl.when(step == pl.num_programs(0) - 1)
    def _pool():
        out_ref[...] = jnp.mean(x.reshape(B, N, D), axis=1)      # (B, D), lane-dense


# ----------------------------- pallas_call wrappers -----------------------------
def fused_videomae(patches, params):
    # Stage 1: patch embedding in its own tiny pallas_call (hoisted; v7x VMEM feedback).
    x0 = pl.pallas_call(
        embed_kernel,
        out_shape=jax.ShapeDtypeStruct((BN, D), jnp.float32),
    )(patches.astype(jnp.bfloat16), params["patch_w_t"], params["patch_b"], params["pos"])

    # Stage 2: fused encoder + mean-pool; weights streamed once per LAYER_BLOCK step.
    in_specs = [
        pl.BlockSpec((BN, D), lambda g: (0, 0)),                                  # tokens
        pl.BlockSpec((LAYER_BLOCK, D, 3 * D), lambda g: (g, 0, 0)),               # fused QKV (bf16)
        pl.BlockSpec((LAYER_BLOCK, HEADS, HEAD_DIM, D), lambda g: (g, 0, 0, 0)),  # out-proj (bf16)
        pl.BlockSpec((LAYER_BLOCK, D, FFN), lambda g: (g, 0, 0)),                 # MLP up (bf16)
        pl.BlockSpec((LAYER_BLOCK, FFN, D), lambda g: (g, 0, 0)),                 # MLP down (bf16)
        pl.BlockSpec((LAYER_BLOCK, VEC_ROWS, FFN), lambda g: (g, 0, 0)),          # packed LN/bias
    ]
    out = pl.pallas_call(
        encoder_kernel,
        out_shape=jax.ShapeDtypeStruct((B, D), jnp.float32),
        grid=(NUM_STEPS,),
        in_specs=in_specs,
        out_specs=pl.BlockSpec((B, D), lambda g: (0, 0)),
        scratch_shapes=[pltpu.VMEM((BN, D), jnp.float32)],       # activation carry
        compiler_params=pltpu.CompilerParams(
            dimension_semantics=("arbitrary",),
            vmem_limit_bytes=32 * 1024 * 1024),
    )(x0, params["wqkv"], params["wo"], params["w1"], params["w2"], params["vecs"])
    return out


# ----------------------------- glue (reshapes / params) -----------------------------
def extract_patches(x):
    """(B, T, C, H, W) -> (B*N, C*ts*ps*ps); matches Conv3d(stride==kernel) + flatten(2).T."""
    x = jnp.transpose(x, (0, 2, 1, 3, 4))                           # (B, C, T, H, W)
    x = x.reshape(B, C, NT, TUBELET, NH, PATCH, NW, PATCH)
    x = jnp.transpose(x, (0, 2, 4, 6, 1, 3, 5, 7))                  # (B, NT, NH, NW, C, ts, ps, ps)
    return x.reshape(BN, P)


def sinusoid_pos_table(n_position, d_hid):
    pos = np.arange(n_position, dtype=np.float64)[:, None]
    i = np.arange(d_hid, dtype=np.float64)[None, :]
    angle = pos / np.power(10000.0, 2.0 * np.floor(i / 2.0) / d_hid)
    table = np.where((np.arange(d_hid)[None, :] % 2) == 0, np.sin(angle), np.cos(angle))
    return jnp.asarray(table, dtype=jnp.float32)


def init_params(key):
    keys = iter(jax.random.split(key, 8 * LAYERS + 2))

    def dense(shape):   # stored pre-transposed vs. torch (out_features, in_features)
        return 0.02 * jax.random.normal(next(keys), shape, dtype=jnp.float32)

    def stacked(shape):
        return jnp.stack([dense(shape) for _ in range(LAYERS)], axis=0)

    wq, wk, wv = stacked((D, D)), stacked((D, D)), stacked((D, D))
    wo = stacked((D, D))

    ones_d = jnp.ones((LAYERS, D), jnp.float32)
    zeros_d = jnp.zeros((LAYERS, D), jnp.float32)
    ln1w, ln1b, bq, bv = ones_d, zeros_d, zeros_d, zeros_d
    bo, ln2w, ln2b, b2 = zeros_d, ones_d, zeros_d, zeros_d
    b1 = jnp.zeros((LAYERS, FFN), jnp.float32)

    # Pack the nine per-layer LN/bias vectors into one (LAYERS, VEC_ROWS, FFN) tensor.
    vecs = jnp.zeros((LAYERS, VEC_ROWS, FFN), jnp.float32)
    vecs = vecs.at[:, 0, :].set(jnp.concatenate([ln1w, ln1b, bq, bv], axis=-1))
    vecs = vecs.at[:, 1, :].set(jnp.concatenate([bo, ln2w, ln2b, b2], axis=-1))
    vecs = vecs.at[:, 2, :].set(b1)

    return {
        # Conv3d weight (D, C, ts, ps, ps) flattened & pre-transposed to (P, D), bf16.
        "patch_w_t": dense((P, D)).astype(jnp.bfloat16),
        "patch_b": jnp.zeros((1, D), jnp.float32),
        "pos": sinusoid_pos_table(N, D),
        # Per-layer matmul weights, bf16, stacked on a leading LAYERS axis.
        "wqkv": jnp.concatenate([wq, wk, wv], axis=-1).astype(jnp.bfloat16),  # (LAYERS, D, 3D)
        "wo": wo.reshape(LAYERS, HEADS, HEAD_DIM, D).astype(jnp.bfloat16),    # head-major rows
        "w1": stacked((D, FFN)).astype(jnp.bfloat16),
        "w2": stacked((FFN, D)).astype(jnp.bfloat16),
        "vecs": vecs,
    }


def videomae_forward(x, params):
    """Equivalent of VideoMAE.forward: mean-pooled last-encoder-layer hidden states
    (hidden_states[-1] is taken before the model's final layernorm)."""
    return fused_videomae(extract_patches(x), params)


# ----------------------------- main -----------------------------
if __name__ == "__main__":
    key = jax.random.PRNGKey(0)
    pkey, xkey = jax.random.split(key)
    params = init_params(pkey)
    x = jax.random.normal(xkey, (B, T, C, IMG, IMG), dtype=jnp.float32)

    out = jax.jit(videomae_forward)(x, params)
    jax.block_until_ready(out)
    assert out.shape == (B, D) and out.dtype == jnp.float32
    print("KERNEL_OK")
</pallas_src>

<mosaic_0001>
module attributes {stable_mosaic.version = 11 : i64} {
  func.func @embed_kernel(%arg0: memref<16x384xbf16, #tpu.memory_space<vmem>>, %arg1: memref<384x128xbf16, #tpu.memory_space<vmem>>, %arg2: memref<1x128xf32, #tpu.memory_space<vmem>>, %arg3: memref<8x128xf32, #tpu.memory_space<vmem>>, %arg4: memref<16x128xf32, #tpu.memory_space<vmem>>) attributes {dimension_semantics = [], scalar_prefetch = 0 : i64, scratch_operands = 0 : i64, tpu.core_type = #tpu.core_type<tc>} {
    %c0 = arith.constant 0 : index
    %c0_0 = arith.constant 0 : index
    %0 = vector.load %arg0[%c0, %c0_0] : memref<16x384xbf16, #tpu.memory_space<vmem>>, vector<16x384xbf16>
    %c0_1 = arith.constant 0 : index
    %c0_2 = arith.constant 0 : index
    %1 = vector.load %arg1[%c0_1, %c0_2] : memref<384x128xbf16, #tpu.memory_space<vmem>>, vector<384x128xbf16>
    %cst = arith.constant dense<0.000000e+00> : vector<16x128xf32>
    %2 = tpu.matmul %0, %1, %cst {dimension_numbers = #tpu.dot_dimension_numbers<[1], [0], [0], [1], [0, 0, 1, 1], [], []>} : vector<16x384xbf16>, vector<384x128xbf16>, vector<16x128xf32> -> vector<16x128xf32>
    %c0_3 = arith.constant 0 : index
    %c0_4 = arith.constant 0 : index
    %3 = vector.load %arg2[%c0_3, %c0_4] : memref<1x128xf32, #tpu.memory_space<vmem>>, vector<1x128xf32>
    %4 = vector.broadcast %3 : vector<1x128xf32> to vector<16x128xf32>
    %5 = arith.addf %2, %4 : vector<16x128xf32>
    %6 = vector.shape_cast %5 : vector<16x128xf32> to vector<2x8x128xf32>
    %c0_5 = arith.constant 0 : index
    %c0_6 = arith.constant 0 : index
    %7 = vector.load %arg3[%c0_5, %c0_6] : memref<8x128xf32, #tpu.memory_space<vmem>>, vector<8x128xf32>
    %8 = vector.shape_cast %7 : vector<8x128xf32> to vector<1x8x128xf32>
    %9 = vector.broadcast %8 : vector<1x8x128xf32> to vector<2x8x128xf32>
    %10 = arith.addf %6, %9 : vector<2x8x128xf32>
    %11 = vector.shape_cast %10 : vector<2x8x128xf32> to vector<16x128xf32>
    %c0_7 = arith.constant 0 : index
    %c0_8 = arith.constant 0 : index
    %12 = vector.load %arg4[%c0_7, %c0_8] : memref<16x128xf32, #tpu.memory_space<vmem>>, vector<16x128xf32>
    tpu.vector_store %arg4[%c0_7, %c0_8], %11 {strides = array<i32>} : memref<16x128xf32, #tpu.memory_space<vmem>>, vector<16x128xf32>,
    return
  }
}

module attributes {stable_mosaic.version = 11 : i64} {
  func.func @encoder_kernel(%arg0: i32, %arg1: memref<16x128xf32, #tpu.memory_space<vmem>>, %arg2: memref<2x128x384xbf16, #tpu.memory_space<vmem>>, %arg3: memref<2x2x64x128xbf16, #tpu.memory_space<vmem>>, %arg4: memref<2x128x512xbf16, #tpu.memory_space<vmem>>, %arg5: memref<2x512x128xbf16, #tpu.memory_space<vmem>>, %arg6: memref<2x8x512xf32, #tpu.memory_space<vmem>>, %arg7: memref<2x128xf32, #tpu.memory_space<vmem>>, %arg8: memref<16x128xf32, #tpu.memory_space<vmem>>) attributes {dimension_semantics = [#tpu.dimension_semantics<arbitrary>], iteration_bounds = array<i64: 1>, scalar_prefetch = 0 : i64, scratch_operands = 1 : i64, tpu.core_type = #tpu.core_type<tc>, window_params = [{pipeline_mode = #tpu.pipeline_mode<synchronous>, transform_indices = @transform_0, window_bounds = array<i64: 16, 128>}, {transform_indices = @transform_1, window_bounds = array<i64: 2, 128, 384>}, {transform_indices = @transform_2, window_bounds = array<i64: 2, 2, 64, 128>}, {transform_indices = @transform_3, window_bounds = array<i64: 2, 128, 512>}, {transform_indices = @transform_4, window_bounds = array<i64: 2, 512, 128>}, {transform_indices = @transform_5, window_bounds = array<i64: 2, 8, 512>}, {pipeline_mode = #tpu.pipeline_mode<synchronous>, transform_indices = @transform_6, window_bounds = array<i64: 2, 128>}]} {
    %c0_i32 = arith.constant 0 : i32
    %0 = arith.cmpi eq, %arg0, %c0_i32 : i32
    %1 = arith.extui %0 : i1 to i32
    %c0_i32_0 = arith.constant 0 : i32
    %2 = arith.cmpi ne, %1, %c0_i32_0 : i32
    scf.if %2 {
      %c0_92 = arith.constant 0 : index
      %c0_93 = arith.constant 0 : index
      %308 = vector.load %arg1[%c0_92, %c0_93] : memref<16x128xf32, #tpu.memory_space<vmem>>, vector<16x128xf32>
      %c0_94 = arith.constant 0 : index
      %c0_95 = arith.constant 0 : index
      %309 = vector.load %arg8[%c0_94, %c0_95] : memref<16x128xf32, #tpu.memory_space<vmem>>, vector<16x128xf32>
      tpu.vector_store %arg8[%c0_94, %c0_95], %308 {strides = array<i32>} : memref<16x128xf32, #tpu.memory_space<vmem>>, vector<16x128xf32>,
    } else {
    }
    %c0 = arith.constant 0 : index
    %c0_1 = arith.constant 0 : index
    %3 = vector.load %arg8[%c0, %c0_1] : memref<16x128xf32, #tpu.memory_space<vmem>>, vector<16x128xf32>
    %c0_2 = arith.constant 0 : index
    %c0_3 = arith.constant 0 : index
    %c0_4 = arith.constant 0 : index
    %4 = vector.load %arg6[%c0_2, %c0_3, %c0_4] : memref<2x8x512xf32, #tpu.memory_space<vmem>>, vector<1x8x512xf32>
    %5 = vector.shape_cast %4 : vector<1x8x512xf32> to vector<8x512xf32>
    %6 = vector.extract_strided_slice %5 {offsets = [0, 0], sizes = [1, 128], strides = [1, 1]} : vector<8x512xf32> to vector<1x128xf32>
    %7 = vector.extract_strided_slice %5 {offsets = [0, 128], sizes = [1, 128], strides = [1, 1]} : vector<8x512xf32> to vector<1x128xf32>
    %8 = vector.extract_strided_slice %5 {offsets = [0, 256], sizes = [1, 128], strides = [1, 1]} : vector<8x512xf32> to vector<1x128xf32>
    %9 = vector.extract_strided_slice %5 {offsets = [0, 384], sizes = [1, 128], strides = [1, 1]} : vector<8x512xf32> to vector<1x128xf32>
    %10 = vector.extract_strided_slice %5 {offsets = [1, 0], sizes = [1, 128], strides = [1, 1]} : vector<8x512xf32> to vector<1x128xf32>
    %11 = vector.extract_strided_slice %5 {offsets = [1, 128], sizes = [1, 128], strides = [1, 1]} : vector<8x512xf32> to vector<1x128xf32>
    %12 = vector.extract_strided_slice %5 {offsets = [1, 256], sizes = [1, 128], strides = [1, 1]} : vector<8x512xf32> to vector<1x128xf32>
    %13 = vector.extract_strided_slice %5 {offsets = [1, 384], sizes = [1, 128], strides = [1, 1]} : vector<8x512xf32> to vector<1x128xf32>
    %14 = vector.extract_strided_slice %5 {offsets = [2, 0], sizes = [1, 512], strides = [1, 1]} : vector<8x512xf32> to vector<1x512xf32>
    %cst = arith.constant dense<0.000000e+00> : vector<16xf32>
    %15 = vector.multi_reduction <add>, %3, %cst [1] : vector<16x128xf32> to vector<16xf32>
    %16 = vector.shape_cast %15 : vector<16xf32> to vector<16x1xf32>
    %cst_5 = arith.constant 1.280000e+02 : f32
    %17 = vector.broadcast %cst_5 : f32 to vector<16x1xf32>
    %18 = arith.divf %16, %17 : vector<16x1xf32>
    %19 = vector.broadcast %18 : vector<16x1xf32> to vector<16x128xf32>
    %20 = arith.subf %3, %19 : vector<16x128xf32>
    %21 = arith.mulf %20, %20 : vector<16x128xf32>
    %cst_6 = arith.constant dense<0.000000e+00> : vector<16xf32>
    %22 = vector.multi_reduction <add>, %21, %cst_6 [1] : vector<16x128xf32> to vector<16xf32>
    %23 = vector.shape_cast %22 : vector<16xf32> to vector<16x1xf32>
    %cst_7 = arith.constant 1.280000e+02 : f32
    %24 = vector.broadcast %cst_7 : f32 to vector<16x1xf32>
    %25 = arith.divf %23, %24 : vector<16x1xf32>
    %26 = vector.broadcast %18 : vector<16x1xf32> to vector<16x128xf32>
    %27 = arith.subf %3, %26 : vector<16x128xf32>
    %cst_8 = arith.constant 9.99999996E-13 : f32
    %28 = vector.broadcast %cst_8 : f32 to vector<16x1xf32>
    %29 = arith.addf %25, %28 : vector<16x1xf32>
    %30 = math.rsqrt %29 : vector<16x1xf32>
    %31 = vector.broadcast %30 : vector<16x1xf32> to vector<16x128xf32>
    %32 = arith.mulf %27, %31 : vector<16x128xf32>
    %33 = vector.broadcast %6 : vector<1x128xf32> to vector<16x128xf32>
    %34 = arith.mulf %32, %33 : vector<16x128xf32>
    %35 = vector.broadcast %7 : vector<1x128xf32> to vector<16x128xf32>
    %36 = arith.addf %34, %35 : vector<16x128xf32>
    %37 = arith.truncf %36 : vector<16x128xf32> to vector<16x128xbf16>
    %c0_9 = arith.constant 0 : index
    %c0_10 = arith.constant 0 : index
    %c0_11 = arith.constant 0 : index
    %38 = vector.load %arg2[%c0_9, %c0_10, %c0_11] : memref<2x128x384xbf16, #tpu.memory_space<vmem>>, vector<1x128x384xbf16>
    %39 = vector.shape_cast %38 : vector<1x128x384xbf16> to vector<128x384xbf16>
    %cst_12 = arith.constant dense<0.000000e+00> : vector<16x384xf32>
    %40 = tpu.matmul %37, %39, %cst_12 {dimension_numbers = #tpu.dot_dimension_numbers<[1], [0], [0], [1], [0, 0, 1, 1], [], []>} : vector<16x128xbf16>, vector<128x384xbf16>, vector<16x384xf32> -> vector<16x384xf32>
    %41 = vector.extract_strided_slice %40 {offsets = [0, 0], sizes = [16, 128], strides = [1, 1]} : vector<16x384xf32> to vector<16x128xf32>
    %42 = vector.broadcast %8 : vector<1x128xf32> to vector<16x128xf32>
    %43 = arith.addf %41, %42 : vector<16x128xf32>
    %44 = vector.extract_strided_slice %40 {offsets = [0, 128], sizes = [16, 128], strides = [1, 1]} : vector<16x384xf32> to vector<16x128xf32>
    %45 = vector.extract_strided_slice %40 {offsets = [0, 256], sizes = [16, 128], strides = [1, 1]} : vector<16x384xf32> to vector<16x128xf32>
    %46 = vector.broadcast %9 : vector<1x128xf32> to vector<16x128xf32>
    %47 = arith.addf %45, %46 : vector<16x128xf32>
    %48 = vector.extract_strided_slice %43 {offsets = [0, 0], sizes = [16, 64], strides = [1, 1]} : vector<16x128xf32> to vector<16x64xf32>
    %49 = vector.shape_cast %48 : vector<16x64xf32> to vector<2x8x64xf32>
    %50 = vector.extract_strided_slice %43 {offsets = [0, 64], sizes = [16, 64], strides = [1, 1]} : vector<16x128xf32> to vector<16x64xf32>
    %51 = vector.shape_cast %50 : vector<16x64xf32> to vector<2x8x64xf32>
    %52 = vector.shape_cast %49 : vector<2x8x64xf32> to vector<1x2x8x64xf32>
    %53 = vector.shape_cast %51 : vector<2x8x64xf32> to vector<1x2x8x64xf32>
    %54 = tpu.concatenate %52, %53 in 0 : vector<1x2x8x64xf32>, vector<1x2x8x64xf32> -> vector<2x2x8x64xf32>
    %55 = vector.shape_cast %54 : vector<2x2x8x64xf32> to vector<4x8x64xf32>
    %56 = arith.truncf %55 : vector<4x8x64xf32> to vector<4x8x64xbf16>
    %57 = vector.extract_strided_slice %44 {offsets = [0, 0], sizes = [16, 64], strides = [1, 1]} : vector<16x128xf32> to vector<16x64xf32>
    %58 = vector.shape_cast %57 : vector<16x64xf32> to vector<2x8x64xf32>
    %59 = vector.extract_strided_slice %44 {offsets = [0, 64], sizes = [16, 64], strides = [1, 1]} : vector<16x128xf32> to vector<16x64xf32>
    %60 = vector.shape_cast %59 : vector<16x64xf32> to vector<2x8x64xf32>
    %61 = vector.shape_cast %58 : vector<2x8x64xf32> to vector<1x2x8x64xf32>
    %62 = vector.shape_cast %60 : vector<2x8x64xf32> to vector<1x2x8x64xf32>
    %63 = tpu.concatenate %61, %62 in 0 : vector<1x2x8x64xf32>, vector<1x2x8x64xf32> -> vector<2x2x8x64xf32>
    %64 = vector.shape_cast %63 : vector<2x2x8x64xf32> to vector<4x8x64xf32>
    %65 = arith.truncf %64 : vector<4x8x64xf32> to vector<4x8x64xbf16>
    %66 = vector.extract_strided_slice %47 {offsets = [0, 0], sizes = [16, 64], strides = [1, 1]} : vector<16x128xf32> to vector<16x64xf32>
    %67 = vector.shape_cast %66 : vector<16x64xf32> to vector<2x8x64xf32>
    %68 = vector.extract_strided_slice %47 {offsets = [0, 64], sizes = [16, 64], strides = [1, 1]} : vector<16x128xf32> to vector<16x64xf32>
    %69 = vector.shape_cast %68 : vector<16x64xf32> to vector<2x8x64xf32>
    %70 = vector.shape_cast %67 : vector<2x8x64xf32> to vector<1x2x8x64xf32>
    %71 = vector.shape_cast %69 : vector<2x8x64xf32> to vector<1x2x8x64xf32>
    %72 = tpu.concatenate %70, %71 in 0 : vector<1x2x8x64xf32>, vector<1x2x8x64xf32> -> vector<2x2x8x64xf32>
    %73 = vector.shape_cast %72 : vector<2x2x8x64xf32> to vector<4x8x64xf32>
    %74 = arith.truncf %73 : vector<4x8x64xf32> to vector<4x8x64xbf16>
    "tpu.trace_start"() <{level = 10 : i32, message = "gnd,gmd->gnm"}> : () -> ()
    %cst_13 = arith.constant dense<0.000000e+00> : vector<4x8x8xf32>
    %75 = tpu.matmul %56, %65, %cst_13 {dimension_numbers = #tpu.dot_dimension_numbers<[2], [2], [1], [1], [0, 0, 0, 1, 1, 1], [0], [0]>} : vector<4x8x64xbf16>, vector<4x8x64xbf16>, vector<4x8x8xf32> -> vector<4x8x8xf32>
    "tpu.trace_stop"() : () -> ()
    %cst_14 = arith.constant 1.250000e-01 : f32
    %76 = vector.broadcast %cst_14 : f32 to vector<4x8x8xf32>
    %77 = arith.mulf %75, %76 : vector<4x8x8xf32>
    %cst_15 = arith.constant dense<0xFF800000> : vector<4x8xf32>
    %78 = vector.multi_reduction <maximumf>, %77, %cst_15 [2] : vector<4x8x8xf32> to vector<4x8xf32>
    %79 = vector.shape_cast %78 : vector<4x8xf32> to vector<4x8x1xf32>
    %80 = vector.broadcast %79 : vector<4x8x1xf32> to vector<4x8x8xf32>
    %81 = arith.subf %77, %80 : vector<4x8x8xf32>
    %82 = math.exp %81 : vector<4x8x8xf32>
    %cst_16 = arith.constant dense<0.000000e+00> : vector<4x8xf32>
    %83 = vector.multi_reduction <add>, %82, %cst_16 [2] : vector<4x8x8xf32> to vector<4x8xf32>
    %84 = vector.shape_cast %83 : vector<4x8xf32> to vector<4x8x1xf32>
    %85 = vector.broadcast %84 : vector<4x8x1xf32> to vector<4x8x8xf32>
    %86 = arith.divf %82, %85 : vector<4x8x8xf32>
    %87 = arith.truncf %86 : vector<4x8x8xf32> to vector<4x8x8xbf16>
    "tpu.trace_start"() <{level = 10 : i32, message = "gnm,gmd->gnd"}> : () -> ()
    %cst_17 = arith.constant dense<0.000000e+00> : vector<4x8x64xf32>
    %88 = tpu.matmul %87, %74, %cst_17 {dimension_numbers = #tpu.dot_dimension_numbers<[2], [1], [1], [2], [0, 0, 0, 1, 1, 2], [0], [0]>} : vector<4x8x8xbf16>, vector<4x8x64xbf16>, vector<4x8x64xf32> -> vector<4x8x64xf32>
    "tpu.trace_stop"() : () -> ()
    %89 = vector.shape_cast %88 : vector<4x8x64xf32> to vector<2x16x64xf32>
    %90 = vector.extract_strided_slice %89 {offsets = [0, 0, 0], sizes = [1, 16, 64], strides = [1, 1, 1]} : vector<2x16x64xf32> to vector<1x16x64xf32>
    %91 = vector.shape_cast %90 : vector<1x16x64xf32> to vector<16x64xf32>
    %92 = arith.truncf %91 : vector<16x64xf32> to vector<16x64xbf16>
    %c0_18 = arith.constant 0 : index
    %c0_19 = arith.constant 0 : index
    %c0_20 = arith.constant 0 : index
    %c0_21 = arith.constant 0 : index
    %93 = vector.load %arg3[%c0_18, %c0_19, %c0_20, %c0_21] : memref<2x2x64x128xbf16, #tpu.memory_space<vmem>>, vector<1x1x64x128xbf16>
    %94 = vector.shape_cast %93 : vector<1x1x64x128xbf16> to vector<64x128xbf16>
    %cst_22 = arith.constant dense<0.000000e+00> : vector<16x128xf32>
    %95 = tpu.matmul %92, %94, %cst_22 {dimension_numbers = #tpu.dot_dimension_numbers<[1], [0], [0], [1], [0, 0, 1, 1], [], []>} : vector<16x64xbf16>, vector<64x128xbf16>, vector<16x128xf32> -> vector<16x128xf32>
    %96 = vector.broadcast %10 : vector<1x128xf32> to vector<16x128xf32>
    %97 = arith.addf %96, %95 : vector<16x128xf32>
    %98 = vector.extract_strided_slice %89 {offsets = [1, 0, 0], sizes = [1, 16, 64], strides = [1, 1, 1]} : vector<2x16x64xf32> to vector<1x16x64xf32>
    %99 = vector.shape_cast %98 : vector<1x16x64xf32> to vector<16x64xf32>
    %100 = arith.truncf %99 : vector<16x64xf32> to vector<16x64xbf16>
    %c0_23 = arith.constant 0 : index
    %c1 = arith.constant 1 : index
    %c0_24 = arith.constant 0 : index
    %c0_25 = arith.constant 0 : index
    %101 = vector.load %arg3[%c0_23, %c1, %c0_24, %c0_25] : memref<2x2x64x128xbf16, #tpu.memory_space<vmem>>, vector<1x1x64x128xbf16>
    %102 = vector.shape_cast %101 : vector<1x1x64x128xbf16> to vector<64x128xbf16>
    %cst_26 = arith.constant dense<0.000000e+00> : vector<16x128xf32>
    %103 = tpu.matmul %100, %102, %cst_26 {dimension_numbers = #tpu.dot_dimension_numbers<[1], [0], [0], [1], [0, 0, 1, 1], [], []>} : vector<16x64xbf16>, vector<64x128xbf16>, vector<16x128xf32> -> vector<16x128xf32>
    %104 = arith.addf %97, %103 : vector<16x128xf32>
    %105 = arith.addf %3, %104 : vector<16x128xf32>
    %cst_27 = arith.constant dense<0.000000e+00> : vector<16xf32>
    %106 = vector.multi_reduction <add>, %105, %cst_27 [1] : vector<16x128xf32> to vector<16xf32>
    %107 = vector.shape_cast %106 : vector<16xf32> to vector<16x1xf32>
    %cst_28 = arith.constant 1.280000e+02 : f32
    %108 = vector.broadcast %cst_28 : f32 to vector<16x1xf32>
    %109 = arith.divf %107, %108 : vector<16x1xf32>
    %110 = vector.broadcast %109 : vector<16x1xf32> to vector<16x128xf32>
    %111 = arith.subf %105, %110 : vector<16x128xf32>
    %112 = arith.mulf %111, %111 : vector<16x128xf32>
    %cst_29 = arith.constant dense<0.000000e+00> : vector<16xf32>
    %113 = vector.multi_reduction <add>, %112, %cst_29 [1] : vector<16x128xf32> to vector<16xf32>
    %114 = vector.shape_cast %113 : vector<16xf32> to vector<16x1xf32>
    %cst_30 = arith.constant 1.280000e+02 : f32
    %115 = vector.broadcast %cst_30 : f32 to vector<16x1xf32>
    %116 = arith.divf %114, %115 : vector<16x1xf32>
    %117 = vector.broadcast %109 : vector<16x1xf32> to vector<16x128xf32>
    %118 = arith.subf %105, %117 : vector<16x128xf32>
    %cst_31 = arith.constant 9.99999996E-13 : f32
    %119 = vector.broadcast %cst_31 : f32 to vector<16x1xf32>
    %120 = arith.addf %116, %119 : vector<16x1xf32>
    %121 = math.rsqrt %120 : vector<16x1xf32>
    %122 = vector.broadcast %121 : vector<16x1xf32> to vector<16x128xf32>
    %123 = arith.mulf %118, %122 : vector<16x128xf32>
    %124 = vector.broadcast %11 : vector<1x128xf32> to vector<16x128xf32>
    %125 = arith.mulf %123, %124 : vector<16x128xf32>
    %126 = vector.broadcast %12 : vector<1x128xf32> to vector<16x128xf32>
    %127 = arith.addf %125, %126 : vector<16x128xf32>
    %128 = arith.truncf %127 : vector<16x128xf32> to vector<16x128xbf16>
    %c0_32 = arith.constant 0 : index
    %c0_33 = arith.constant 0 : index
    %c0_34 = arith.constant 0 : index
    %129 = vector.load %arg4[%c0_32, %c0_33, %c0_34] : memref<2x128x512xbf16, #tpu.memory_space<vmem>>, vector<1x128x512xbf16>
    %130 = vector.shape_cast %129 : vector<1x128x512xbf16> to vector<128x512xbf16>
    %cst_35 = arith.constant dense<0.000000e+00> : vector<16x512xf32>
    %131 = tpu.matmul %128, %130, %cst_35 {dimension_numbers = #tpu.dot_dimension_numbers<[1], [0], [0], [1], [0, 0, 1, 1], [], []>} : vector<16x128xbf16>, vector<128x512xbf16>, vector<16x512xf32> -> vector<16x512xf32>
    %132 = vector.broadcast %14 : vector<1x512xf32> to vector<16x512xf32>
    %133 = arith.addf %131, %132 : vector<16x512xf32>
    %134 = arith.mulf %133, %133 : vector<16x512xf32>
    %135 = arith.mulf %133, %134 : vector<16x512xf32>
    %cst_36 = arith.constant 4.471500e-02 : f32
    %136 = vector.broadcast %cst_36 : f32 to vector<16x512xf32>
    %137 = arith.mulf %136, %135 : vector<16x512xf32>
    %138 = arith.addf %133, %137 : vector<16x512xf32>
    %cst_37 = arith.constant 0.797884583 : f32
    %139 = vector.broadcast %cst_37 : f32 to vector<16x512xf32>
    %140 = arith.mulf %139, %138 : vector<16x512xf32>
    %141 = math.tanh %140 : vector<16x512xf32>
    %cst_38 = arith.constant 1.000000e+00 : f32
    %142 = vector.broadcast %cst_38 : f32 to vector<16x512xf32>
    %143 = arith.addf %142, %141 : vector<16x512xf32>
    %cst_39 = arith.constant 5.000000e-01 : f32
    %144 = vector.broadcast %cst_39 : f32 to vector<16x512xf32>
    %145 = arith.mulf %144, %143 : vector<16x512xf32>
    %146 = arith.mulf %133, %145 : vector<16x512xf32>
    %147 = arith.truncf %146 : vector<16x512xf32> to vector<16x512xbf16>
    %c0_40 = arith.constant 0 : index
    %c0_41 = arith.constant 0 : index
    %c0_42 = arith.constant 0 : index
    %148 = vector.load %arg5[%c0_40, %c0_41, %c0_42] : memref<2x512x128xbf16, #tpu.memory_space<vmem>>, vector<1x512x128xbf16>
    %149 = vector.shape_cast %148 : vector<1x512x128xbf16> to vector<512x128xbf16>
    %cst_43 = arith.constant dense<0.000000e+00> : vector<16x128xf32>
    %150 = tpu.matmul %147, %149, %cst_43 {dimension_numbers = #tpu.dot_dimension_numbers<[1], [0], [0], [1], [0, 0, 1, 1], [], []>} : vector<16x512xbf16>, vector<512x128xbf16>, vector<16x128xf32> -> vector<16x128xf32>
    %151 = vector.broadcast %13 : vector<1x128xf32> to vector<16x128xf32>
    %152 = arith.addf %150, %151 : vector<16x128xf32>
    %153 = arith.addf %105, %152 : vector<16x128xf32>
    %c1_44 = arith.constant 1 : index
    %c0_45 = arith.constant 0 : index
    %c0_46 = arith.constant 0 : index
    %154 = vector.load %arg6[%c1_44, %c0_45, %c0_46] : memref<2x8x512xf32, #tpu.memory_space<vmem>>, vector<1x8x512xf32>
    %155 = vector.shape_cast %154 : vector<1x8x512xf32> to vector<8x512xf32>
    %156 = vector.extract_strided_slice %155 {offsets = [0, 0], sizes = [1, 128], strides = [1, 1]} : vector<8x512xf32> to vector<1x128xf32>
    %157 = vector.extract_strided_slice %155 {offsets = [0, 128], sizes = [1, 128], strides = [1, 1]} : vector<8x512xf32> to vector<1x128xf32>
    %158 = vector.extract_strided_slice %155 {offsets = [0, 256], sizes = [1, 128], strides = [1, 1]} : vector<8x512xf32> to vector<1x128xf32>
    %159 = vector.extract_strided_slice %155 {offsets = [0, 384], sizes = [1, 128], strides = [1, 1]} : vector<8x512xf32> to vector<1x128xf32>
    %160 = vector.extract_strided_slice %155 {offsets = [1, 0], sizes = [1, 128], strides = [1, 1]} : vector<8x512xf32> to vector<1x128xf32>
    %161 = vector.extract_strided_slice %155 {offsets = [1, 128], sizes = [1, 128], strides = [1, 1]} : vector<8x512xf32> to vector<1x128xf32>
    %162 = vector.extract_strided_slice %155 {offsets = [1, 256], sizes = [1, 128], strides = [1, 1]} : vector<8x512xf32> to vector<1x128xf32>
    %163 = vector.extract_strided_slice %155 {offsets = [1, 384], sizes = [1, 128], strides = [1, 1]} : vector<8x512xf32> to vector<1x128xf32>
    %164 = vector.extract_strided_slice %155 {offsets = [2, 0], sizes = [1, 512], strides = [1, 1]} : vector<8x512xf32> to vector<1x512xf32>
    %cst_47 = arith.constant dense<0.000000e+00> : vector<16xf32>
    %165 = vector.multi_reduction <add>, %153, %cst_47 [1] : vector<16x128xf32> to vector<16xf32>
    %166 = vector.shape_cast %165 : vector<16xf32> to vector<16x1xf32>
    %cst_48 = arith.constant 1.280000e+02 : f32
    %167 = vector.broadcast %cst_48 : f32 to vector<16x1xf32>
    %168 = arith.divf %166, %167 : vector<16x1xf32>
    %169 = vector.broadcast %168 : vector<16x1xf32> to vector<16x128xf32>
    %170 = arith.subf %153, %169 : vector<16x128xf32>
    %171 = arith.mulf %170, %170 : vector<16x128xf32>
    %cst_49 = arith.constant dense<0.000000e+00> : vector<16xf32>
    %172 = vector.multi_reduction <add>, %171, %cst_49 [1] : vector<16x128xf32> to vector<16xf32>
    %173 = vector.shape_cast %172 : vector<16xf32> to vector<16x1xf32>
    %cst_50 = arith.constant 1.280000e+02 : f32
    %174 = vector.broadcast %cst_50 : f32 to vector<16x1xf32>
    %175 = arith.divf %173, %174 : vector<16x1xf32>
    %176 = vector.broadcast %168 : vector<16x1xf32> to vector<16x128xf32>
    %177 = arith.subf %153, %176 : vector<16x128xf32>
    %cst_51 = arith.constant 9.99999996E-13 : f32
    %178 = vector.broadcast %cst_51 : f32 to vector<16x1xf32>
    %179 = arith.addf %175, %178 : vector<16x1xf32>
    %180 = math.rsqrt %179 : vector<16x1xf32>
    %181 = vector.broadcast %180 : vector<16x1xf32> to vector<16x128xf32>
    %182 = arith.mulf %177, %181 : vector<16x128xf32>
    %183 = vector.broadcast %156 : vector<1x128xf32> to vector<16x128xf32>
    %184 = arith.mulf %182, %183 : vector<16x128xf32>
    %185 = vector.broadcast %157 : vector<1x128xf32> to vector<16x128xf32>
    %186 = arith.addf %184, %185 : vector<16x128xf32>
    %187 = arith.truncf %186 : vector<16x128xf32> to vector<16x128xbf16>
    %c1_52 = arith.constant 1 : index
    %c0_53 = arith.constant 0 : index
    %c0_54 = arith.constant 0 : index
    %188 = vector.load %arg2[%c1_52, %c0_53, %c0_54] : memref<2x128x384xbf16, #tpu.memory_space<vmem>>, vector<1x128x384xbf16>
    %189 = vector.shape_cast %188 : vector<1x128x384xbf16> to vector<128x384xbf16>
    %cst_55 = arith.constant dense<0.000000e+00> : vector<16x384xf32>
    %190 = tpu.matmul %187, %189, %cst_55 {dimension_numbers = #tpu.dot_dimension_numbers<[1], [0], [0], [1], [0, 0, 1, 1], [], []>} : vector<16x128xbf16>, vector<128x384xbf16>, vector<16x384xf32> -> vector<16x384xf32>
    %191 = vector.extract_strided_slice %190 {offsets = [0, 0], sizes = [16, 128], strides = [1, 1]} : vector<16x384xf32> to vector<16x128xf32>
    %192 = vector.broadcast %158 : vector<1x128xf32> to vector<16x128xf32>
    %193 = arith.addf %191, %192 : vector<16x128xf32>
    %194 = vector.extract_strided_slice %190 {offsets = [0, 128], sizes = [16, 128], strides = [1, 1]} : vector<16x384xf32> to vector<16x128xf32>
    %195 = vector.extract_strided_slice %190 {offsets = [0, 256], sizes = [16, 128], strides = [1, 1]} : vector<16x384xf32> to vector<16x128xf32>
    %196 = vector.broadcast %159 : vector<1x128xf32> to vector<16x128xf32>
    %197 = arith.addf %195, %196 : vector<16x128xf32>
    %198 = vector.extract_strided_slice %193 {offsets = [0, 0], sizes = [16, 64], strides = [1, 1]} : vector<16x128xf32> to vector<16x64xf32>
    %199 = vector.shape_cast %198 : vector<16x64xf32> to vector<2x8x64xf32>
    %200 = vector.extract_strided_slice %193 {offsets = [0, 64], sizes = [16, 64], strides = [1, 1]} : vector<16x128xf32> to vector<16x64xf32>
    %201 = vector.shape_cast %200 : vector<16x64xf32> to vector<2x8x64xf32>
    %202 = vector.shape_cast %199 : vector<2x8x64xf32> to vector<1x2x8x64xf32>
    %203 = vector.shape_cast %201 : vector<2x8x64xf32> to vector<1x2x8x64xf32>
    %204 = tpu.concatenate %202, %203 in 0 : vector<1x2x8x64xf32>, vector<1x2x8x64xf32> -> vector<2x2x8x64xf32>
    %205 = vector.shape_cast %204 : vector<2x2x8x64xf32> to vector<4x8x64xf32>
    %206 = arith.truncf %205 : vector<4x8x64xf32> to vector<4x8x64xbf16>
    %207 = vector.extract_strided_slice %194 {offsets = [0, 0], sizes = [16, 64], strides = [1, 1]} : vector<16x128xf32> to vector<16x64xf32>
    %208 = vector.shape_cast %207 : vector<16x64xf32> to vector<2x8x64xf32>
    %209 = vector.extract_strided_slice %194 {offsets = [0, 64], sizes = [16, 64], strides = [1, 1]} : vector<16x128xf32> to vector<16x64xf32>
    %210 = vector.shape_cast %209 : vector<16x64xf32> to vector<2x8x64xf32>
    %211 = vector.shape_cast %208 : vector<2x8x64xf32> to vector<1x2x8x64xf32>
    %212 = vector.shape_cast %210 : vector<2x8x64xf32> to vector<1x2x8x64xf32>
    %213 = tpu.concatenate %211, %212 in 0 : vector<1x2x8x64xf32>, vector<1x2x8x64xf32> -> vector<2x2x8x64xf32>
    %214 = vector.shape_cast %213 : vector<2x2x8x64xf32> to vector<4x8x64xf32>
    %215 = arith.truncf %214 : vector<4x8x64xf32> to vector<4x8x64xbf16>
    %216 = vector.extract_strided_slice %197 {offsets = [0, 0], sizes = [16, 64], strides = [1, 1]} : vector<16x128xf32> to vector<16x64xf32>
    %217 = vector.shape_cast %216 : vector<16x64xf32> to vector<2x8x64xf32>
    %218 = vector.extract_strided_slice %197 {offsets = [0, 64], sizes = [16, 64], strides = [1, 1]} : vector<16x128xf32> to vector<16x64xf32>
    %219 = vector.shape_cast %218 : vector<16x64xf32> to vector<2x8x64xf32>
    %220 = vector.shape_cast %217 : vector<2x8x64xf32> to vector<1x2x8x64xf32>
    %221 = vector.shape_cast %219 : vector<2x8x64xf32> to vector<1x2x8x64xf32>
    %222 = tpu.concatenate %220, %221 in 0 : vector<1x2x8x64xf32>, vector<1x2x8x64xf32> -> vector<2x2x8x64xf32>
    %223 = vector.shape_cast %222 : vector<2x2x8x64xf32> to vector<4x8x64xf32>
    %224 = arith.truncf %223 : vector<4x8x64xf32> to vector<4x8x64xbf16>
    "tpu.trace_start"() <{level = 10 : i32, message = "gnd,gmd->gnm"}> : () -> ()
    %cst_56 = arith.constant dense<0.000000e+00> : vector<4x8x8xf32>
    %225 = tpu.matmul %206, %215, %cst_56 {dimension_numbers = #tpu.dot_dimension_numbers<[2], [2], [1], [1], [0, 0, 0, 1, 1, 1], [0], [0]>} : vector<4x8x64xbf16>, vector<4x8x64xbf16>, vector<4x8x8xf32> -> vector<4x8x8xf32>
    "tpu.trace_stop"() : () -> ()
    %cst_57 = arith.constant 1.250000e-01 : f32
    %226 = vector.broadcast %cst_57 : f32 to vector<4x8x8xf32>
    %227 = arith.mulf %225, %226 : vector<4x8x8xf32>
    %cst_58 = arith.constant dense<0xFF800000> : vector<4x8xf32>
    %228 = vector.multi_reduction <maximumf>, %227, %cst_58 [2] : vector<4x8x8xf32> to vector<4x8xf32>
    %229 = vector.shape_cast %228 : vector<4x8xf32> to vector<4x8x1xf32>
    %230 = vector.broadcast %229 : vector<4x8x1xf32> to vector<4x8x8xf32>
    %231 = arith.subf %227, %230 : vector<4x8x8xf32>
    %232 = math.exp %231 : vector<4x8x8xf32>
    %cst_59 = arith.constant dense<0.000000e+00> : vector<4x8xf32>
    %233 = vector.multi_reduction <add>, %232, %cst_59 [2] : vector<4x8x8xf32> to vector<4x8xf32>
    %234 = vector.shape_cast %233 : vector<4x8xf32> to vector<4x8x1xf32>
    %235 = vector.broadcast %234 : vector<4x8x1xf32> to vector<4x8x8xf32>
    %236 = arith.divf %232, %235 : vector<4x8x8xf32>
    %237 = arith.truncf %236 : vector<4x8x8xf32> to vector<4x8x8xbf16>
    "tpu.trace_start"() <{level = 10 : i32, message = "gnm,gmd->gnd"}> : () -> ()
    %cst_60 = arith.constant dense<0.000000e+00> : vector<4x8x64xf32>
    %238 = tpu.matmul %237, %224, %cst_60 {dimension_numbers = #tpu.dot_dimension_numbers<[2], [1], [1], [2], [0, 0, 0, 1, 1, 2], [0], [0]>} : vector<4x8x8xbf16>, vector<4x8x64xbf16>, vector<4x8x64xf32> -> vector<4x8x64xf32>
    "tpu.trace_stop"() : () -> ()
    %239 = vector.shape_cast %238 : vector<4x8x64xf32> to vector<2x16x64xf32>
    %240 = vector.extract_strided_slice %239 {offsets = [0, 0, 0], sizes = [1, 16, 64], strides = [1, 1, 1]} : vector<2x16x64xf32> to vector<1x16x64xf32>
    %241 = vector.shape_cast %240 : vector<1x16x64xf32> to vector<16x64xf32>
    %242 = arith.truncf %241 : vector<16x64xf32> to vector<16x64xbf16>
    %c1_61 = arith.constant 1 : index
    %c0_62 = arith.constant 0 : index
    %c0_63 = arith.constant 0 : index
    %c0_64 = arith.constant 0 : index
    %243 = vector.load %arg3[%c1_61, %c0_62, %c0_63, %c0_64] : memref<2x2x64x128xbf16, #tpu.memory_space<vmem>>, vector<1x1x64x128xbf16>
    %244 = vector.shape_cast %243 : vector<1x1x64x128xbf16> to vector<64x128xbf16>
    %cst_65 = arith.constant dense<0.000000e+00> : vector<16x128xf32>
    %245 = tpu.matmul %242, %244, %cst_65 {dimension_numbers = #tpu.dot_dimension_numbers<[1], [0], [0], [1], [0, 0, 1, 1], [], []>} : vector<16x64xbf16>, vector<64x128xbf16>, vector<16x128xf32> -> vector<16x128xf32>
    %246 = vector.broadcast %160 : vector<1x128xf32> to vector<16x128xf32>
    %247 = arith.addf %246, %245 : vector<16x128xf32>
    %248 = vector.extract_strided_slice %239 {offsets = [1, 0, 0], sizes = [1, 16, 64], strides = [1, 1, 1]} : vector<2x16x64xf32> to vector<1x16x64xf32>
    %249 = vector.shape_cast %248 : vector<1x16x64xf32> to vector<16x64xf32>
    %250 = arith.truncf %249 : vector<16x64xf32> to vector<16x64xbf16>
    %c1_66 = arith.constant 1 : index
    %c1_67 = arith.constant 1 : index
    %c0_68 = arith.constant 0 : index
    %c0_69 = arith.constant 0 : index
    %251 = vector.load %arg3[%c1_66, %c1_67, %c0_68, %c0_69] : memref<2x2x64x128xbf16, #tpu.memory_space<vmem>>, vector<1x1x64x128xbf16>
    %252 = vector.shape_cast %251 : vector<1x1x64x128xbf16> to vector<64x128xbf16>
    %cst_70 = arith.constant dense<0.000000e+00> : vector<16x128xf32>
    %253 = tpu.matmul %250, %252, %cst_70 {dimension_numbers = #tpu.dot_dimension_numbers<[1], [0], [0], [1], [0, 0, 1, 1], [], []>} : vector<16x64xbf16>, vector<64x128xbf16>, vector<16x128xf32> -> vector<16x128xf32>
    %254 = arith.addf %247, %253 : vector<16x128xf32>
    %255 = arith.addf %153, %254 : vector<16x128xf32>
    %cst_71 = arith.constant dense<0.000000e+00> : vector<16xf32>
    %256 = vector.multi_reduction <add>, %255, %cst_71 [1] : vector<16x128xf32> to vector<16xf32>
    %257 = vector.shape_cast %256 : vector<16xf32> to vector<16x1xf32>
    %cst_72 = arith.constant 1.280000e+02 : f32
    %258 = vector.broadcast %cst_72 : f32 to vector<16x1xf32>
    %259 = arith.divf %257, %258 : vector<16x1xf32>
    %260 = vector.broadcast %259 : vector<16x1xf32> to vector<16x128xf32>
    %261 = arith.subf %255, %260 : vector<16x128xf32>
    %262 = arith.mulf %261, %261 : vector<16x128xf32>
    %cst_73 = arith.constant dense<0.000000e+00> : vector<16xf32>
    %263 = vector.multi_reduction <add>, %262, %cst_73 [1] : vector<16x128xf32> to vector<16xf32>
    %264 = vector.shape_cast %263 : vector<16xf32> to vector<16x1xf32>
    %cst_74 = arith.constant 1.280000e+02 : f32
    %265 = vector.broadcast %cst_74 : f32 to vector<16x1xf32>
    %266 = arith.divf %264, %265 : vector<16x1xf32>
    %267 = vector.broadcast %259 : vector<16x1xf32> to vector<16x128xf32>
    %268 = arith.subf %255, %267 : vector<16x128xf32>
    %cst_75 = arith.constant 9.99999996E-13 : f32
    %269 = vector.broadcast %cst_75 : f32 to vector<16x1xf32>
    %270 = arith.addf %266, %269 : vector<16x1xf32>
    %271 = math.rsqrt %270 : vector<16x1xf32>
    %272 = vector.broadcast %271 : vector<16x1xf32> to vector<16x128xf32>
    %273 = arith.mulf %268, %272 : vector<16x128xf32>
    %274 = vector.broadcast %161 : vector<1x128xf32> to vector<16x128xf32>
    %275 = arith.mulf %273, %274 : vector<16x128xf32>
    %276 = vector.broadcast %162 : vector<1x128xf32> to vector<16x128xf32>
    %277 = arith.addf %275, %276 : vector<16x128xf32>
    %278 = arith.truncf %277 : vector<16x128xf32> to vector<16x128xbf16>
    %c1_76 = arith.constant 1 : index
    %c0_77 = arith.constant 0 : index
    %c0_78 = arith.constant 0 : index
    %279 = vector.load %arg4[%c1_76, %c0_77, %c0_78] : memref<2x128x512xbf16, #tpu.memory_space<vmem>>, vector<1x128x512xbf16>
    %280 = vector.shape_cast %279 : vector<1x128x512xbf16> to vector<128x512xbf16>
    %cst_79 = arith.constant dense<0.000000e+00> : vector<16x512xf32>
    %281 = tpu.matmul %278, %280, %cst_79 {dimension_numbers = #tpu.dot_dimension_numbers<[1], [0], [0], [1], [0, 0, 1, 1], [], []>} : vector<16x128xbf16>, vector<128x512xbf16>, vector<16x512xf32> -> vector<16x512xf32>
    %282 = vector.broadcast %164 : vector<1x512xf32> to vector<16x512xf32>
    %283 = arith.addf %281, %282 : vector<16x512xf32>
    %284 = arith.mulf %283, %283 : vector<16x512xf32>
    %285 = arith.mulf %283, %284 : vector<16x512xf32>
    %cst_80 = arith.constant 4.471500e-02 : f32
    %286 = vector.broadcast %cst_80 : f32 to vector<16x512xf32>
    %287 = arith.mulf %286, %285 : vector<16x512xf32>
    %288 = arith.addf %283, %287 : vector<16x512xf32>
    %cst_81 = arith.constant 0.797884583 : f32
    %289 = vector.broadcast %cst_81 : f32 to vector<16x512xf32>
    %290 = arith.mulf %289, %288 : vector<16x512xf32>
    %291 = math.tanh %290 : vector<16x512xf32>
    %cst_82 = arith.constant 1.000000e+00 : f32
    %292 = vector.broadcast %cst_82 : f32 to vector<16x512xf32>
    %293 = arith.addf %292, %291 : vector<16x512xf32>
    %cst_83 = arith.constant 5.000000e-01 : f32
    %294 = vector.broadcast %cst_83 : f32 to vector<16x512xf32>
    %295 = arith.mulf %294, %293 : vector<16x512xf32>
    %296 = arith.mulf %283, %295 : vector<16x512xf32>
    %297 = arith.truncf %296 : vector<16x512xf32> to vector<16x512xbf16>
    %c1_84 = arith.constant 1 : index
    %c0_85 = arith.constant 0 : index
    %c0_86 = arith.constant 0 : index
    %298 = vector.load %arg5[%c1_84, %c0_85, %c0_86] : memref<2x512x128xbf16, #tpu.memory_space<vmem>>, vector<1x512x128xbf16>
    %299 = vector.shape_cast %298 : vector<1x512x128xbf16> to vector<512x128xbf16>
    %cst_87 = arith.constant dense<0.000000e+00> : vector<16x128xf32>
    %300 = tpu.matmul %297, %299, %cst_87 {dimension_numbers = #tpu.dot_dimension_numbers<[1], [0], [0], [1], [0, 0, 1, 1], [], []>} : vector<16x512xbf16>, vector<512x128xbf16>, vector<16x128xf32> -> vector<16x128xf32>
    %301 = vector.broadcast %163 : vector<1x128xf32> to vector<16x128xf32>
    %302 = arith.addf %300, %301 : vector<16x128xf32>
    %303 = arith.addf %255, %302 : vector<16x128xf32>
    %c0_88 = arith.constant 0 : index
    %c0_89 = arith.constant 0 : index
    %304 = vector.load %arg8[%c0_88, %c0_89] : memref<16x128xf32, #tpu.memory_space<vmem>>, vector<16x128xf32>
    tpu.vector_store %arg8[%c0_88, %c0_89], %303 {strides = array<i32>} : memref<16x128xf32, #tpu.memory_space<vmem>>, vector<16x128xf32>,
    %c0_i32_90 = arith.constant 0 : i32
    %305 = arith.cmpi eq, %arg0, %c0_i32_90 : i32
    %306 = arith.extui %305 : i1 to i32
    %c0_i32_91 = arith.constant 0 : i32
    %307 = arith.cmpi ne, %306, %c0_i32_91 : i32
    scf.if %307 {
      %308 = vector.shape_cast %303 : vector<16x128xf32> to vector<2x8x128xf32>
      %cst_92 = arith.constant dense<0.000000e+00> : vector<2x128xf32>
      %309 = vector.multi_reduction <add>, %308, %cst_92 [1] : vector<2x8x128xf32> to vector<2x128xf32>
      %cst_93 = arith.constant 8.000000e+00 : f32
      %310 = vector.broadcast %cst_93 : f32 to vector<2x128xf32>
      %311 = arith.divf %309, %310 : vector<2x128xf32>
      %c0_94 = arith.constant 0 : index
      %c0_95 = arith.constant 0 : index
      %312 = vector.load %arg7[%c0_94, %c0_95] : memref<2x128xf32, #tpu.memory_space<vmem>>, vector<2x128xf32>
      tpu.vector_store %arg7[%c0_94, %c0_95], %311 {strides = array<i32>} : memref<2x128xf32, #tpu.memory_space<vmem>>, vector<2x128xf32>,
    } else {
    }
    return
  }
  func.func @transform_0(%arg0: i32) -> (i32, i32) {
    %c0_i32 = arith.constant 0 : i32
    %c0_i32_0 = arith.constant 0 : i32
    %c0_i32_1 = arith.constant 0 : i32
    return %c0_i32, %c0_i32_0 : i32, i32
  }
  func.func @transform_1(%arg0: i32) -> (i32, i32, i32) {
    %c0_i32 = arith.constant 0 : i32
    %c0_i32_0 = arith.constant 0 : i32
    %c0_i32_1 = arith.constant 0 : i32
    return %arg0, %c0_i32, %c0_i32_0 : i32, i32, i32
  }
  func.func @transform_2(%arg0: i32) -> (i32, i32, i32, i32) {
    %c0_i32 = arith.constant 0 : i32
    %c0_i32_0 = arith.constant 0 : i32
    %c0_i32_1 = arith.constant 0 : i32
    %c0_i32_2 = arith.constant 0 : i32
    return %arg0, %c0_i32, %c0_i32_0, %c0_i32_1 : i32, i32, i32, i32
  }
  func.func @transform_3(%arg0: i32) -> (i32, i32, i32) {
    %c0_i32 = arith.constant 0 : i32
    %c0_i32_0 = arith.constant 0 : i32
    %c0_i32_1 = arith.constant 0 : i32
    return %arg0, %c0_i32, %c0_i32_0 : i32, i32, i32
  }
  func.func @transform_4(%arg0: i32) -> (i32, i32, i32) {
    %c0_i32 = arith.constant 0 : i32
    %c0_i32_0 = arith.constant 0 : i32
    %c0_i32_1 = arith.constant 0 : i32
    return %arg0, %c0_i32, %c0_i32_0 : i32, i32, i32
  }
  func.func @transform_5(%arg0: i32) -> (i32, i32, i32) {
    %c0_i32 = arith.constant 0 : i32
    %c0_i32_0 = arith.constant 0 : i32
    %c0_i32_1 = arith.constant 0 : i32
    return %arg0, %c0_i32, %c0_i32_0 : i32, i32, i32
  }
  func.func @transform_6(%arg0: i32) -> (i32, i32) {
    %c0_i32 = arith.constant 0 : i32
    %c0_i32_0 = arith.constant 0 : i32
    %c0_i32_1 = arith.constant 0 : i32
    return %c0_i32, %c0_i32_0 : i32, i32
  }
}

</mosaic_0001>

<bundles_post_ra>
// kernel: videomae_forward.2
= control target key start
LH: loop header
LB: loop body
LE: loop exit
PB: predicated region body
PF: predicated region fallthrough
CT: control target
= control target key end

     0   :  { %v437_v1 = vmov 0.0   ;;  %vm438_vm0 = vmmov 0   ;;  %s557_s1 = inlined_call_operand.vmem [shape: bf16[384,128], index: 1, kind: input, shape index: {}]   ;;  %s558_s0 = inlined_call_operand.vmem [shape: bf16[16,384], index: 0, kind: input, shape index: {}]   ;;  %s559_s2 = inlined_call_operand.vmem [shape: f32[1,128], index: 2, kind: input, shape index: {}]   ;;  %s560_s3 = inlined_call_operand.vmem [shape: f32[8,128], index: 3, kind: input, shape index: {}]   ;;  %s561_s4 = inlined_call_operand.vmem [shape: f32[16,128], index: 4, kind: output, shape index: {}]  }
   0x1   :  { %v409_v0 = vld [vmem:[%s557_s1 + $0x78] sm:$0xff]   ;;  %387 = vmatprep.subr.bf16.mxu1 %v437_v1  ;;  %403 = vmatprep.mubr.msk.bf16.mxu1 %vm438_vm0, %v437_v1  ;;  %v412_v4 = vld [vmem:[%s557_s1 + $0x70] sm:$0xff]   ;;  %v415_v7 = vld [vmem:[%s557_s1 + $0x68] sm:$0xff]  }
   0x2   :  { %v410_v2 = vld [vmem:[%s557_s1 + $0x38] sm:$0xff]   ;;  %356 = vmatprep.subr.bf16.mxu0 %v409_v0  ;;  %v413_v5 = vld [vmem:[%s557_s1 + $0x30] sm:$0xff]   ;;  %v416_v8 = vld [vmem:[%s557_s1 + $0x28] sm:$0xff]  }
   0x3   :  { %v411_v3 = vld [vmem:[%s557_s1 + $0xb8] sm:$0xff]   ;;  %357 = vmatpush3.bf16.msra.mxu0 %v410_v2  ;;  %v414_v6 = vld [vmem:[%s557_s1 + $0xb0] sm:$0xff]   ;;  %v417_v9 = vld [vmem:[%s557_s1 + $0xa8] sm:$0xff]  }
   0x4   :  { %388 = vmatpush3.bf16.msra.mxu1 %v411_v3  ;;  %358 = vmatprep.subr.bf16.mxu0 %v412_v4  ;;  %v418_v10 = vld [vmem:[%s557_s1 + $0x60] sm:$0xff]   ;;  %v421_v13 = vld [vmem:[%s557_s1 + $0x58] sm:$0xff]   ;;  %v424_v16 = vld [vmem:[%s557_s1 + $0x50] sm:$0xff]  }
   0x5   :  { %389 = vmatprep.subr.bf16.mxu1 %v437_v1  ;;  %v419_v11 = vld [vmem:[%s557_s1 + $0x20] sm:$0xff]   ;;  %v422_v14 = vld [vmem:[%s557_s1 + $0x18] sm:$0xff]   ;;  %v425_v17 = vld [vmem:[%s557_s1 + $0x10] sm:$0xff]  }
   0x6   :  { %v420_v12 = vld [vmem:[%s557_s1 + $0xa0] sm:$0xff]   ;;  %v423_v15 = vld [vmem:[%s557_s1 + $0x98] sm:$0xff]   ;;  %v426_v18 = vld [vmem:[%s557_s1 + $0x90] sm:$0xff]  }
   0x7   :  { %359 = vmatpush3.bf16.msra.mxu0 %v413_v5  ;;  %v427_v19 = vld [vmem:[%s557_s1 + $0x48] sm:$0xff]   ;;  %v430_v22 = vld [vmem:[%s557_s1 + $0x40] sm:$0xff]  }
   0x8   :  { %390 = vmatpush3.bf16.msra.mxu1 %v414_v6  ;;  %360 = vmatprep.subr.bf16.mxu0 %v415_v7  ;;  %v428_v20 = vld [vmem:[%s557_s1 + $0x8] sm:$0xff]   ;;  %v435_v23 = vld [vmem:[%s558_s0 + $0x4] ss:$12 sps:$4 sm:$0xff]   ;;  %v328_v30 = vld [vmem:[%s559_s2] ss:$0 sm:$0xff] }
   0x9   :  { %391 = vmatprep.subr.bf16.mxu1 %v437_v1  ;;  %v429_v21 = vld [vmem:[%s557_s1 + $0x88] sm:$0xff]   ;;  %v431_v24 = vld [vmem:[%s557_s1] sm:$0xff]   ;;  %269 = vmatprep.mubr.bf16.mxu0 %v435_v23 }
   0xa   :  { %v432_v25 = vld [vmem:[%s557_s1 + $0x80] sm:$0xff]   ;;  %v436_v27 = vld [vmem:[%s558_s0 + $0x8] ss:$12 sps:$4 sm:$0xff]  }
   0xb   :  { %361 = vmatpush3.bf16.msra.mxu0 %v416_v8  ;;  %v433_v26 = vld [vmem:[%s558_s0] ss:$12 sps:$4 sm:$0xff]  }
   0xc   :  { %392 = vmatpush3.bf16.msra.mxu1 %v417_v9  ;;  %362 = vmatprep.subr.bf16.mxu0 %v418_v10  ;;  %v319_v37 = vld [vmem:[%s560_s3] sm:$0xff] }
   0xd   :  { %393 = vmatprep.subr.bf16.mxu1 %v437_v1 }
   0xf   :  { %363 = vmatpush3.bf16.msra.mxu0 %v419_v11 }
  0x10   :  { %394 = vmatpush3.bf16.msra.mxu1 %v420_v12  ;;  %364 = vmatprep.subr.bf16.mxu0 %v421_v13 }
  0x11   :  { %395 = vmatprep.subr.bf16.mxu1 %v437_v1 }
  0x13   :  { %365 = vmatpush3.bf16.msra.mxu0 %v422_v14 }
  0x14   :  { %396 = vmatpush3.bf16.msra.mxu1 %v423_v15  ;;  %366 = vmatprep.subr.bf16.mxu0 %v424_v16 }
  0x15   :  { %397 = vmatprep.subr.bf16.mxu1 %v437_v1 }
  0x17   :  { %367 = vmatpush3.bf16.msra.mxu0 %v425_v17 }
  0x18   :  { %398 = vmatpush3.bf16.msra.mxu1 %v426_v18  ;;  %368 = vmatprep.subr.bf16.mxu0 %v427_v19 }
  0x19   :  { %399 = vmatprep.subr.bf16.mxu1 %v437_v1 }
  0x1b   :  { %369 = vmatpush3.bf16.msra.mxu0 %v428_v20 }
  0x1c   :  { %400 = vmatpush3.bf16.msra.mxu1 %v429_v21  ;;  %370 = vmatprep.subr.bf16.mxu0 %v430_v22 }
  0x1d   :  { %401 = vmatprep.subr.bf16.mxu1 %v437_v1 }
  0x1f   :  { %371 = vmatpush3.bf16.msra.mxu0 %v431_v24 }
  0x20   :  { %402 = vmatpush3.bf16.msra.mxu1 %v432_v25 }
  0x22   :  { %270 = vmatmul.mubr.bf16.vlgmr.msra.gmra.mxu0 %v433_v26 }
  0x23   :  { %404 = vmatmul.mubr.bf16.vlgmr.msra.gmra.mxu1 %v436_v27 }
  0xe2   :  { %v372_v28 = vpop.f32.mrf.mxu0 }
  0xe3   :  { %v312_v29 = vpop.f32.mrf.mxu1 }
  0xe4   :  { %v373_v31 = vpop.f32.mrf.mxu0 }
  0xe5   :  { %v374_v32 = vadd.f32 %v373_v31, %v372_v28  ;;  %v405_v33 = vpop.f32.mrf.mxu1 }
  0xe6   :  { %v375_v34 = vpop.f32.mrf.mxu0 }
  0xe7   :  { %v272_v35 = vadd.f32 %v374_v32, %v328_v30  ;;  %v315_v36 = vpop.f32.mrf.mxu1 }
  0xe8   :  { %v376_v38 = vpop.f32.mrf.mxu0 }
  0xe9   :  { %v313_v39 = vadd.f32 %v312_v29, %v272_v35  ;;  %v377_v40 = vadd.f32 %v376_v38, %v375_v34  ;;  %v406_v41 = vpop.f32.mrf.mxu1 }
  0xeb   :  { %v320_v42 = vadd.f32 %v319_v37, %v313_v39  ;;  %v275_v43 = vadd.f32 %v377_v40, %v328_v30 }
  0xed   :  { %322 = vst [vmem:[%s561_s4] sm:$0xff] %v320_v42  ;;  %v316_v44 = vadd.f32 %v315_v36, %v275_v43 }
  0xef   :  { %v321_v45 = vadd.f32 %v319_v37, %v316_v44 }
  0xf1   :  { %323 = vst [vmem:[%s561_s4 + $0x8] sm:$0xff] %v321_v45 }

// kernel: videomae_forward.3
= control target key start
LH: loop header
LB: loop body
LE: loop exit
PB: predicated region body
PF: predicated region fallthrough
CT: control target
= control target key end

     0   :  { %v4503_v4 = vmov 0.0   ;;  %s5597_s0 = inlined_call_operand.vmem [shape: f32[16,128], index: 0, kind: input, shape index: {}]   ;;  %s5598_s1 = inlined_call_operand.vmem [shape: bf16[2,128,384], index: 1, kind: input, shape index: {}]   ;;  %s5599_s2 = inlined_call_operand.vmem [shape: bf16[2,2,64,128], index: 2, kind: input, shape index: {}]   ;;  %s5600_s3 = inlined_call_operand.vmem [shape: bf16[2,128,512], index: 3, kind: input, shape index: {}]   ;;  %s5601_s4 = inlined_call_operand.vmem [shape: bf16[2,512,128], index: 4, kind: input, shape index: {}]   ;;  %s5602_s5 = inlined_call_operand.vmem [shape: f32[2,8,512], index: 5, kind: input, shape index: {}]   ;;  %s5603_s6 = inlined_call_operand.hbm [shape: f32[2,128], index: 6, kind: output, shape index: {}]  }
   0x1   :  { %v29_v0 = vld [vmem:[%s5597_s0] sm:$0xff]  ;;  %v30_v1 = vld [vmem:[%s5597_s0 + $0x8] sm:$0xff]  ;;  %3940 = vmatprep.subr.bf16.mxu1 %v4503_v4  ;;  %v4162_v5 = vld [vmem:[%s5598_s1 + $0xb0] ss:$12 sps:$4 sm:$0xff]  }
   0x2   :  { %39 = vadd.xlane.f32.xlu0 %v29_v0  ;;  %v4159_v2 = vld [vmem:[%s5598_s1 + $0xac] ss:$12 sps:$4 sm:$0xff]   ;;  %v4161_v3 = vld [vmem:[%s5598_s1 + $0xa8] ss:$12 sps:$4 sm:$0xff]   ;;  %3941 = vmatpush3.bf16.msra.mxu1 %v4162_v5 }
   0x3   :  { %235 = vmatprep.subr.bf16.mxu0 %v4159_v2  ;;  %3942 = vmatprep.subr.bf16.mxu1 %v4503_v4 }
   0x4   :  { %236 = vmatpush1.bf16.msra.mxu0 %v4161_v3 }
   0x6   :  { %41 = vadd.xlane.f32.xlu0 %v30_v1 }
   0x7   :  { %11 = vsyncpa [#allocation4], 0  ;;  %v4163_v14 = vld [vmem:[%s5598_s1 + $0x94] ss:$12 sps:$4 sm:$0xff]   ;;  %v4165_v15 = vld [vmem:[%s5598_s1 + $0x90] ss:$12 sps:$4 sm:$0xff]   ;;  %v62_v42 = vlaneseq }
   0x8   :  { %v4166_v16 = vld [vmem:[%s5598_s1 + $0x98] ss:$12 sps:$4 sm:$0xff]   ;;  %237 = vmatprep.subr.bf16.mxu0 %v4163_v14  ;;  %v4167_v17 = vld [vmem:[%s5598_s1 + $0x7c] ss:$12 sps:$4 sm:$0xff]   ;;  %v4170_v19 = vld [vmem:[%s5598_s1 + $0x80] ss:$12 sps:$4 sm:$0xff]  }
   0x9   :  { %238 = vmatpush1.bf16.msra.mxu0 %v4165_v15  ;;  %3943 = vmatpush3.bf16.msra.mxu1 %v4166_v16  ;;  %v4169_v18 = vld [vmem:[%s5598_s1 + $0x78] ss:$12 sps:$4 sm:$0xff]   ;;  %v4173_v21 = vld [vmem:[%s5598_s1 + $0x60] ss:$12 sps:$4 sm:$0xff]   ;;  %v4174_v22 = vld [vmem:[%s5598_s1 + $0x68] ss:$12 sps:$4 sm:$0xff]  }
   0xa   :  { %3944 = vmatprep.subr.bf16.mxu1 %v4503_v4  ;;  %239 = vmatprep.subr.bf16.mxu0 %v4167_v17  ;;  %v4171_v20 = vld [vmem:[%s5598_s1 + $0x64] ss:$12 sps:$4 sm:$0xff]   ;;  %v4175_v23 = vld [vmem:[%s5598_s1 + $0x4c] ss:$12 sps:$4 sm:$0xff]   ;;  %v4177_v24 = vld [vmem:[%s5598_s1 + $0x48] ss:$12 sps:$4 sm:$0xff]  }
   0xb   :  { %v4178_v25 = vld [vmem:[%s5598_s1 + $0x50] ss:$12 sps:$4 sm:$0xff]   ;;  %v4179_v26 = vld [vmem:[%s5598_s1 + $0x34] ss:$12 sps:$4 sm:$0xff]   ;;  %v4504_v27 = vmov 0   ;;  %vm4505_vm0 = vmmov 0  }
   0xc   :  { %267 = vmatprep.mubr.bf16.mxu0 %v4504_v27  ;;  %3956 = vmatprep.mubr.msk.bf16.mxu1 %vm4505_vm0, %v4503_v4  ;;  %v4181_v28 = vld [vmem:[%s5598_s1 + $0x30] ss:$12 sps:$4 sm:$0xff]   ;;  %v4182_v29 = vld [vmem:[%s5598_s1 + $0x38] ss:$12 sps:$4 sm:$0xff]   ;;  %v4186_v32 = vld [vmem:[%s5598_s1 + $0x20] ss:$12 sps:$4 sm:$0xff]  }
   0xd   :  { %240 = vmatpush1.bf16.msra.mxu0 %v4169_v18  ;;  %3945 = vmatpush3.bf16.msra.mxu1 %v4170_v19  ;;  %v4183_v30 = vld [vmem:[%s5598_s1 + $0x1c] ss:$12 sps:$4 sm:$0xff]   ;;  %v4185_v31 = vld [vmem:[%s5598_s1 + $0x18] ss:$12 sps:$4 sm:$0xff]   ;;  %v4189_v34 = vld [vmem:[%s5598_s1] ss:$12 sps:$4 sm:$0xff]  }
   0xe   :  { %3946 = vmatprep.subr.bf16.mxu1 %v4503_v4  ;;  %241 = vmatprep.subr.bf16.mxu0 %v4171_v20  ;;  %v4187_v33 = vld [vmem:[%s5598_s1 + $0x4] ss:$12 sps:$4 sm:$0xff]   ;;  %v4190_v35 = vld [vmem:[%s5598_s1 + $0x8] ss:$12 sps:$4 sm:$0xff]   ;;  %v4642_v43 = vshrl.u32 %v62_v42, 7  ;;  %v4675_v59 = vld [vmem:[%s5602_s5 + $0x18] sm:$0xff] }
   0xf   :  { %v4650_v45 = vld [vmem:[%s5602_s5] sm:$0xff]  ;;  %v4658_v49 = vld [vmem:[%s5602_s5 + $0x8] sm:$0xff]  ;;  %v4670_v58 = vld [vmem:[%s5602_s5 + $0x10] sm:$0xff]  ;;  %vm367_vm1 = vcmask 523264   ;;  %s4506_s9 = smov 64   ;;  %vm608_vm2 = vcmask 1043456  }
  0x10   :  { %v4645_v44 = vsub.s32 0, %v4642_v43  ;;  %vm556_vm3 = vcmask 64512   ;;  %vm3396_vm4 = vcmask 1041409  }
  0x11   :  { %242 = vmatpush1.bf16.msra.mxu0 %v4173_v21  ;;  %3947 = vmatpush3.bf16.msra.mxu1 %v4174_v22 }
  0x12   :  { %243 = vmatprep.subr.bf16.mxu0 %v4175_v23  ;;  %3948 = vmatprep.subr.bf16.mxu1 %v4503_v4  ;;  %v65_v48 = vrot.slane %v4650_v45, %v4645_v44  ;;  %v71_v53 = vrot.slane %v4658_v49, %v4645_v44  ;;  %v322_v61 = vrot.slane %v4670_v58, %v4645_v44 }
  0x13   :  { %v328_v63 = vrot.slane %v4675_v59, %v4645_v44 }
  0x15   :  { %244 = vmatpush1.bf16.msra.mxu0 %v4177_v24  ;;  %3949 = vmatpush3.bf16.msra.mxu1 %v4178_v25 }
  0x16   :  { %245 = vmatprep.subr.bf16.mxu0 %v4179_v26  ;;  %3950 = vmatprep.subr.bf16.mxu1 %v4503_v4 }
  0x19   :  { %246 = vmatpush1.bf16.msra.mxu0 %v4181_v28  ;;  %3951 = vmatpush3.bf16.msra.mxu1 %v4182_v29 }
  0x1a   :  { %247 = vmatprep.subr.bf16.mxu0 %v4183_v30  ;;  %3952 = vmatprep.subr.bf16.mxu1 %v4503_v4 }
  0x1d   :  { %248 = vmatpush1.bf16.msra.mxu0 %v4185_v31  ;;  %3953 = vmatpush3.bf16.msra.mxu1 %v4186_v32 }
  0x1e   :  { %249 = vmatprep.subr.bf16.mxu0 %v4187_v33  ;;  %3954 = vmatprep.subr.bf16.mxu1 %v4503_v4 }
  0x21   :  { %250 = vmatpush1.bf16.msra.mxu0 %v4189_v34  ;;  %3955 = vmatpush3.bf16.msra.mxu1 %v4190_v35 }
  0x22   :  { %3960 = vmatprep.subr.bf16.mxu0 %v4503_v4  ;;  %3966 = vmatprep.subr.bf16.mxu1 %v4503_v4 }
  0x8b   :  { %v40_v6 = vpop.xlane.xlu0 %39 }
  0x8c   :  { %v44_v7 = vmul.f32 0.0078125, %v40_v6 }
  0x8e   :  { %v4560_v8 = vsub.f32 %v29_v0, %v44_v7 }
  0x8f   :  { %v42_v9 = vpop.xlane.xlu0 %41 }
  0x90   :  { %v45_v10 = vmul.f32 0.0078125, %v42_v9  ;;  %v48_v11 = vmul.f32 %v4560_v8, %v4560_v8 }
  0x92   :  { %v4564_v12 = vsub.f32 %v30_v1, %v45_v10  ;;  %50 = vadd.xlane.f32.xlu1 %v48_v11 }
  0x94   :  { %v49_v13 = vmul.f32 %v4564_v12, %v4564_v12 }
  0x96   :  { %52 = vadd.xlane.f32.xlu1 %v49_v13 }
 0x11b   :  { %v51_v36 = vpop.xlane.xlu1 %50 }
 0x11c   :  { %v54_v37 = vmul.f32 0.0078125, %v51_v36 }
 0x11e   :  { %v56_v38 = vadd.f32 1e-12, %v54_v37 }
 0x11f   :  { %v53_v39 = vpop.xlane.xlu1 %52 }
 0x120   :  { %4399 = vrsqrt.f32 %v56_v38  ;;  %v55_v40 = vmul.f32 0.0078125, %v53_v39 }
 0x122   :  { %v57_v41 = vadd.f32 1e-12, %v55_v40 }
 0x124   :  { %4401 = vrsqrt.f32 %v57_v41 }
 0x12d   :  { %v4400_v46 = vpop.eup %4399 }
 0x12e   :  { %v60_v47 = vmul.f32 %v4400_v46, %v4560_v8 }
 0x130   :  { %v66_v52 = vmul.f32 %v65_v48, %v60_v47 }
 0x131   :  { %v4402_v50 = vpop.eup %4401 }
 0x132   :  { %v61_v51 = vmul.f32 %v4402_v50, %v4564_v12  ;;  %v72_v55 = vadd.f32 %v71_v53, %v66_v52 }
 0x134   :  { %v67_v54 = vmul.f32 %v65_v48, %v61_v51 }
 0x136   :  { %v73_v56 = vadd.f32 %v71_v53, %v67_v54 }
 0x138   :  { %v74_v57 = vpack.c.bf16 %v73_v56, %v72_v55 }
 0x13a   :  { %268 = vmatmul.mubr.bf16.vlgmr.msra.gmra.mxu0 %v74_v57  ;;  %3957 = vmatmul.mubr.bf16.vlgmr.msra.gmra.mxu1 %v74_v57 }
 0x13b   :  { %3962 = vmatprep.mubr.msk.bf16.mxu0 %vm4505_vm0, %v4503_v4  ;;  %3968 = vmatprep.mubr.msk.bf16.mxu1 %vm4505_vm0, %v4503_v4 }
 0x1fa   :  { %v269_v60 = vpop.f32.mrf.mxu0  ;;  %v312_v62 = vpop.f32.mrf.mxu1 }
 0x1fb   :  { %v323_v3 = vadd.f32 %v322_v61, %v269_v60  ;;  %v4681_v7 = vadd.f32 %v328_v63, %v312_v62 }
 0x1fc   :  { %v271_v0 = vpop.f32.mrf.mxu0  ;;  %v3958_v1 = vpop.f32.mrf.mxu1 }
 0x1fd   :  { %v351_v2 = vpack.c.bf16 %v271_v0, %v271_v0  ;;  %v339_v18 = vpack.c.bf16 %v323_v3, %v323_v3  ;;  %v363_v31 = vpack.c.bf16 %v4681_v7, %v4681_v7 }
 0x1fe   :  { %v273_v5 = vpop.f32.mrf.mxu0  ;;  %v315_v6 = vpop.f32.mrf.mxu1 }
 0x1ff   :  { %v324_v8 = vadd.f32 %v322_v61, %v273_v5  ;;  %v4683_v9 = vadd.f32 %v328_v63, %v315_v6  ;;  %v372_v10 = vsel %vm367_vm1, %v351_v2, 0  ;;  %v610_v35 = vsel %vm608_vm2, %v363_v31, 0 }
 0x200   :  { %v275_v11 = vpop.f32.mrf.mxu0  ;;  %v3959_v12 = vpop.f32.mrf.mxu1  ;;  %3961 = vmatpush3.bf16.xpose.msra.mxu0 %v372_v10 }
 0x201   :  { %v4134_v13 = vpack.i.bf16 %v324_v8, %v323_v3  ;;  %v4139_v14 = vpack.i.bf16 %v4683_v9, %v4681_v7  ;;  %3972 = vmatprep.subr.bf16.mxu0 %v4503_v4  ;;  %v4129_v15 = vpack.i.bf16 %v275_v11, %v271_v0  ;;  %v352_v16 = vpack.c.bf16 %v275_v11, %v275_v11 }
 0x202   :  { %v340_v19 = vpack.c.bf16 %v324_v8, %v324_v8  ;;  %v364_v32 = vpack.c.bf16 %v4683_v9, %v4683_v9 }
 0x203   :  { %4135 = vrot.lane.b32.xlu1 %v4134_v13, %s4506_s9  ;;  %4130 = vrot.lane.b32.xlu0 %v4129_v15, %s4506_s9  ;;  %v418_v17 = vsel %vm367_vm1, %v352_v16, 0 }
 0x204   :  { %3967 = vmatpush3.bf16.xpose.msra.mxu1 %v418_v17  ;;  %v656_v36 = vsel %vm608_vm2, %v364_v32, 0 }
 0x205   :  { %3978 = vmatprep.subr.bf16.mxu1 %v4503_v4 }
 0x207   :  { %3963 = vmatmul.mubr.msk.bf16.vlgmr.msra.gmra.mxu0 %vm367_vm1, %v339_v18 }
 0x208   :  { %3974 = vmatprep.mubr.msk.bf16.mxu0 %vm4505_vm0, %v4503_v4 }
 0x20b   :  { %3969 = vmatmul.mubr.msk.bf16.vlgmr.msra.gmra.mxu1 %vm367_vm1, %v340_v19 }
 0x20c   :  { %3980 = vmatprep.mubr.msk.bf16.mxu1 %vm4505_vm0, %v4503_v4 }
 0x275   :  { %v4131_v20 = vpop.permute.xlu0 %4130  ;;  %v4136_v25 = vpop.permute.xlu1 %4135 }
 0x276   :  { %v4133_v21 = vunpack.i.h.bf16 %v4131_v20  ;;  %v4132_v22 = vunpack.i.l.bf16 %v4131_v20  ;;  %v4138_v29 = vunpack.i.h.bf16 %v4136_v25  ;;  %v4137_v30 = vunpack.i.l.bf16 %v4136_v25 }
 0x278   :  { %v354_v23 = vpack.c.bf16 %v4133_v21, %v4133_v21  ;;  %v353_v24 = vpack.c.bf16 %v4132_v22, %v4132_v22  ;;  %v342_v33 = vpack.c.bf16 %v4138_v29, %v4138_v29  ;;  %v341_v34 = vpack.c.bf16 %v4137_v30, %v4137_v30 }
 0x27a   :  { %v464_v26 = vsel %vm367_vm1, %v353_v24, 0  ;;  %v510_v28 = vsel %vm367_vm1, %v354_v23, 0 }
 0x27b   :  { %3973 = vmatpush3.bf16.xpose.msra.mxu0 %v464_v26  ;;  %3979 = vmatpush3.bf16.xpose.msra.mxu1 %v510_v28 }
 0x27c   :  { %3984 = vmatprep.subr.bf16.mxu0 %v4503_v4  ;;  %3990 = vmatprep.subr.bf16.mxu1 %v4503_v4 }
 0x282   :  { %3975 = vmatmul.mubr.msk.bf16.vlgmr.msra.gmra.mxu0 %vm367_vm1, %v341_v34  ;;  %3981 = vmatmul.mubr.msk.bf16.vlgmr.msra.gmra.mxu1 %vm367_vm1, %v342_v33 }
 0x283   :  { %3985 = vmatpush3.bf16.msra.mxu0 %v610_v35  ;;  %3991 = vmatpush3.bf16.msra.mxu1 %v656_v36 }
 0x284   :  { %3986 = vmatprep.mubr.msk.bf16.mxu0 %vm4505_vm0, %v4503_v4  ;;  %3992 = vmatprep.mubr.msk.bf16.mxu1 %vm4505_vm0, %v4503_v4 }
 0x285   :  { %3996 = vmatprep.subr.bf16.mxu0 %v4503_v4  ;;  %4002 = vmatprep.subr.bf16.mxu1 %v4503_v4 }
 0x2c7   :  { %v408_v37 = vpop.f32.mrf.mxu0 }
 0x2c8   :  { %v552_v38 = vmul.f32 0.125, %v408_v37 }
 0x2c9   :  { %v3964_v39 = vpop.f32.mrf.mxu0 }
 0x2ca   :  { %v557_v40 = vsel %vm556_vm3, %v552_v38, -inf }
 0x2cb   :  { %558 = vmax.xlane.f32.xlu1 %v557_v40  ;;  %v411_v41 = vpop.f32.mrf.mxu0  ;;  %v454_v42 = vpop.f32.mrf.mxu1 }
 0x2cc   :  { %v553_v46 = vmul.f32 0.125, %v454_v42 }
 0x2cd   :  { %v3965_v47 = vpop.f32.mrf.mxu0  ;;  %v3970_v48 = vpop.f32.mrf.mxu1 }
 0x2ce   :  { %v560_v50 = vsel %vm556_vm3, %v553_v46, -inf }
 0x2cf   :  { %561 = vmax.xlane.f32.xlu0 %v560_v50  ;;  %v457_v51 = vpop.f32.mrf.mxu1  ;;  %v4191_v50 = vld [vmem:[%s5599_s2 + $0x18] sm:$0xff]  }
 0x2d1   :  { %v3971_v52 = vpop.f32.mrf.mxu1 }
 0x342   :  { %v500_v53 = vpop.f32.mrf.mxu0  ;;  %v546_v54 = vpop.f32.mrf.mxu1 }
 0x343   :  { %v554_v55 = vmul.f32 0.125, %v500_v53  ;;  %v555_v56 = vmul.f32 0.125, %v546_v54  ;;  %v4195_v53 = vld [vmem:[%s5599_s2 + $0x38] sm:$0xff]   ;;  %v4192_v54 = vld [vmem:[%s5599_s2 + $0x10] sm:$0xff]  }
 0x344   :  { %v3976_v57 = vpop.f32.mrf.mxu0  ;;  %v3982_v60 = vpop.f32.mrf.mxu1 }
 0x345   :  { %v563_v61 = vsel %vm556_vm3, %v554_v55, -inf  ;;  %v566_v62 = vsel %vm556_vm3, %v555_v56, -inf  ;;  %v4197_v57 = vld [vmem:[%s5599_s2 + $0x28] sm:$0xff]   ;;  %v4194_v60 = vld [vmem:[%s5599_s2] sm:$0xff]  }
 0x346   :  { %v503_v63 = vpop.f32.mrf.mxu0  ;;  %564 = vmax.xlane.f32.xlu0 %v563_v61  ;;  %567 = vmax.xlane.f32.xlu1 %v566_v62  ;;  %v549_v0 = vpop.f32.mrf.mxu1  ;;  %v4198_v61 = vld [vmem:[%s5599_s2 + $0x20] sm:$0xff]  }
 0x348   :  { %v3977_v1 = vpop.f32.mrf.mxu0  ;;  %v3983_v2 = vpop.f32.mrf.mxu1 }
 0x354   :  { %v559_v3 = vpop.xlane.xlu1 %558 }
 0x355   :  { %v569_v5 = vsub.f32 %v552_v38, %v559_v3 }
 0x357   :  { %v573_v6 = vmul.f32 1.442695, %v569_v5 }
 0x358   :  { %v562_v8 = vpop.xlane.xlu0 %561 }
 0x359   :  { %4403 = vpow2.f32 %v573_v6  ;;  %v570_v10 = vsub.f32 %v553_v46, %v562_v8 }
 0x35b   :  { %v575_v11 = vmul.f32 1.442695, %v570_v10 }
 0x35d   :  { %4405 = vpow2.f32 %v575_v11 }
 0x366   :  { %v4404_v12 = vpop.eup %4403 }
 0x367   :  { %v581_v13 = vsel %vm556_vm3, %v4404_v12, 0.0 }
 0x368   :  { %582 = vadd.xlane.f32.xlu0 %v581_v13 }
 0x36a   :  { %v4406_v15 = vpop.eup %4405 }
 0x36b   :  { %v584_v16 = vsel %vm556_vm3, %v4406_v15, 0.0 }
 0x36c   :  { %585 = vadd.xlane.f32.xlu1 %v584_v16 }
 0x3cf   :  { %v565_v17 = vpop.xlane.xlu0 %564  ;;  %v568_v18 = vpop.xlane.xlu1 %567 }
 0x3d0   :  { %v571_v19 = vsub.f32 %v554_v55, %v565_v17  ;;  %v572_v20 = vsub.f32 %v555_v56, %v568_v18  ;;  %v4196_v55 = vld [vmem:[%s5599_s2 + $0x30] sm:$0xff]   ;;  %v4193_v56 = vld [vmem:[%s5599_s2 + $0x8] sm:$0xff]  }
 0x3d2   :  { %v577_v21 = vmul.f32 1.442695, %v571_v19  ;;  %v579_v22 = vmul.f32 1.442695, %v572_v20 }
 0x3d4   :  { %4407 = vpow2.f32 %v577_v21 }
 0x3d5   :  { %4409 = vpow2.f32 %v579_v22 }
 0x3e1   :  { %v4408_v23 = vpop.eup %4407 }
 0x3e2   :  { %v4410_v24 = vpop.eup %4409  ;;  %v587_v25 = vsel %vm556_vm3, %v4408_v23, 0.0 }
 0x3e3   :  { %588 = vadd.xlane.f32.xlu0 %v587_v25  ;;  %v590_v26 = vsel %vm556_vm3, %v4410_v24, 0.0 }
 0x3e4   :  { %591 = vadd.xlane.f32.xlu1 %v590_v26 }
 0x3f1   :  { %v583_v28 = vpop.xlane.xlu0 %582 }
 0x3f2   :  { %4411 = vrcp.f32 %v583_v28 }
 0x3f5   :  { %v586_v29 = vpop.xlane.xlu1 %585 }
 0x3f6   :  { %4413 = vrcp.f32 %v586_v29 }
 0x3f9   :  { %4140 = vrot.lane.b32.xlu0 %v4139_v14, %s4506_s9 }
 0x3ff   :  { %v4412_v30 = vpop.eup %4411 }
 0x400   :  { %v594_v31 = vmul.f32 %v4412_v30, %v4404_v12 }
 0x402   :  { %v601_v32 = vpack.c.bf16 %v594_v31, %v594_v31 }
 0x403   :  { %v4414_v33 = vpop.eup %4413 }
 0x404   :  { %3987 = vmatmul.mubr.msk.bf16.vlgmr.msra.gmra.mxu0 %vm556_vm3, %v601_v32  ;;  %v596_v34 = vmul.f32 %v4414_v33, %v4406_v15  ;;  %v4479_v32 = vld [vmem:[%s5597_s0] sm:$0xff] }
 0x405   :  { %3998 = vmatprep.mubr.msk.bf16.mxu0 %vm4505_vm0, %v4503_v4 }
 0x406   :  { %v602_v35 = vpack.c.bf16 %v596_v34, %v596_v34 }
 0x408   :  { %3993 = vmatmul.mubr.msk.bf16.vlgmr.msra.gmra.mxu1 %vm556_vm3, %v602_v35 }
 0x409   :  { %4004 = vmatprep.mubr.msk.bf16.mxu1 %vm4505_vm0, %v4503_v4 }
 0x46c   :  { %v589_v36 = vpop.xlane.xlu0 %588 }
 0x46d   :  { %4415 = vrcp.f32 %v589_v36  ;;  %v592_v7 = vpop.xlane.xlu1 %591 }
 0x46e   :  { %4417 = vrcp.f32 %v592_v7  ;;  %v4480_v7 = vld [vmem:[%s5597_s0 + $0x8] sm:$0xff] }
 0x470   :  { %v4141_v9 = vpop.permute.xlu0 %4140 }
 0x471   :  { %v4143_v14 = vunpack.i.h.bf16 %v4141_v9  ;;  %v4142_v37 = vunpack.i.l.bf16 %v4141_v9 }
 0x473   :  { %v366_v38 = vpack.c.bf16 %v4143_v14, %v4143_v14  ;;  %v365_v39 = vpack.c.bf16 %v4142_v37, %v4142_v37  ;;  %v4199_v14 = vld [vmem:[%s5600_s3 + $0xe0] ss:$16 sps:$4 sm:$0xff]   ;;  %v4201_v37 = vld [vmem:[%s5600_s3 + $0xe4] ss:$16 sps:$4 sm:$0xff]  }
 0x475   :  { %v702_v40 = vsel %vm608_vm2, %v365_v39, 0  ;;  %v748_v41 = vsel %vm608_vm2, %v366_v38, 0  ;;  %v4202_v38 = vld [vmem:[%s5600_s3 + $0xe8] ss:$16 sps:$4 sm:$0xff]   ;;  %v4204_v39 = vld [vmem:[%s5600_s3 + $0xec] ss:$16 sps:$4 sm:$0xff]  }
 0x476   :  { %3997 = vmatpush3.bf16.msra.mxu0 %v702_v40  ;;  %4003 = vmatpush3.bf16.msra.mxu1 %v748_v41 }
 0x477   :  { %4008 = vmatprep.subr.bf16.mxu0 %v4503_v4  ;;  %4020 = vmatprep.subr.bf16.mxu1 %v4503_v4 }
 0x47a   :  { %v4416_v42 = vpop.eup %4415 }
 0x47b   :  { %v4418_v46 = vpop.eup %4417  ;;  %v598_v47 = vmul.f32 %v4416_v42, %v4408_v23 }
 0x47c   :  { %v600_v48 = vmul.f32 %v4418_v46, %v4410_v24  ;;  %v4780_v24 = vsub.s32 1, %v4642_v43 }
 0x47d   :  { %v603_v51 = vpack.c.bf16 %v598_v47, %v598_v47 }
 0x47e   :  { %v604_v52 = vpack.c.bf16 %v600_v48, %v600_v48  ;;  %v870_v25 = vrot.slane %v4650_v45, %v4780_v24 }
 0x47f   :  { %3999 = vmatmul.mubr.msk.bf16.vlgmr.msra.gmra.mxu0 %vm556_vm3, %v603_v51 }
 0x480   :  { %4005 = vmatmul.mubr.msk.bf16.vlgmr.msra.gmra.mxu1 %vm556_vm3, %v604_v52  ;;  %4009 = vmatpush3.bf16.msra.mxu0 %v4191_v50  ;;  %v4207_v52 = vld [vmem:[%s5600_s3 + $0xc4] ss:$16 sps:$4 sm:$0xff]  }
 0x481   :  { %4010 = vmatprep.subr.bf16.mxu0 %v4503_v4  ;;  %4016 = vmatprep.mubr.msk.bf16.mxu0 %vm4505_vm0, %v4503_v4 }
 0x482   :  { %4021 = vmatpush3.bf16.msra.mxu1 %v4195_v53  ;;  %4028 = vmatprep.mubr.msk.bf16.mxu1 %vm4505_vm0, %v4503_v4  ;;  %v4210_v53 = vld [vmem:[%s5600_s3 + $0xcc] ss:$16 sps:$4 sm:$0xff]  }
 0x483   :  { %4022 = vmatprep.subr.bf16.mxu1 %v4503_v4 }
 0x484   :  { %4011 = vmatpush3.bf16.msra.mxu0 %v4192_v54  ;;  %v4205_v54 = vld [vmem:[%s5600_s3 + $0xc0] ss:$16 sps:$4 sm:$0xff]  }
 0x485   :  { %4012 = vmatprep.subr.bf16.mxu0 %v4503_v4 }
 0x486   :  { %4023 = vmatpush3.bf16.msra.mxu1 %v4196_v55  ;;  %v4208_v55 = vld [vmem:[%s5600_s3 + $0xc8] ss:$16 sps:$4 sm:$0xff]  }
 0x487   :  { %4024 = vmatprep.subr.bf16.mxu1 %v4503_v4 }
 0x488   :  { %4013 = vmatpush3.bf16.msra.mxu0 %v4193_v56  ;;  %v4213_v56 = vld [vmem:[%s5600_s3 + $0xa4] ss:$16 sps:$4 sm:$0xff]  }
 0x489   :  { %4014 = vmatprep.subr.bf16.mxu0 %v4503_v4 }
 0x48a   :  { %4025 = vmatpush3.bf16.msra.mxu1 %v4197_v57  ;;  %v4216_v57 = vld [vmem:[%s5600_s3 + $0xac] ss:$16 sps:$4 sm:$0xff]  }
 0x48b   :  { %4026 = vmatprep.subr.bf16.mxu1 %v4503_v4 }
 0x48c   :  { %4015 = vmatpush3.bf16.msra.mxu0 %v4194_v60  ;;  %v4211_v60 = vld [vmem:[%s5600_s3 + $0xa0] ss:$16 sps:$4 sm:$0xff]  }
 0x48d   :  { %1198 = vmatprep.subr.bf16.mxu0 %v4201_v37 }
 0x48e   :  { %4027 = vmatpush3.bf16.msra.mxu1 %v4198_v61  ;;  %v4214_v61 = vld [vmem:[%s5600_s3 + $0xa8] ss:$16 sps:$4 sm:$0xff]  }
 0x48f   :  { %1241 = vmatprep.subr.bf16.mxu1 %v4204_v39 }
 0x4c4   :  { %v646_v62 = vpop.f32.mrf.mxu0 }
 0x4c6   :  { %v3988_v63 = vpop.f32.mrf.mxu0 }
 0x4c7   :  { %v4219_v63 = vld [vmem:[%s5600_s3 + $0x84] ss:$16 sps:$4 sm:$0xff]  }
 0x4c8   :  { %v649_v0 = vpop.f32.mrf.mxu0  ;;  %v692_v1 = vpop.f32.mrf.mxu1 }
 0x4c9   :  { %v790_v2 = vpack.c.bf16 %v692_v1, %v646_v62  ;;  %v4217_v62 = vld [vmem:[%s5600_s3 + $0x80] ss:$16 sps:$4 sm:$0xff]   ;;  %v4220_v0 = vld [vmem:[%s5600_s3 + $0x88] ss:$16 sps:$4 sm:$0xff]   ;;  %v4222_v1 = vld [vmem:[%s5600_s3 + $0x8c] ss:$16 sps:$4 sm:$0xff]  }
 0x4ca   :  { %v3989_v3 = vpop.f32.mrf.mxu0  ;;  %v3994_v5 = vpop.f32.mrf.mxu1 }
 0x4cb   :  { %4017 = vmatmul.mubr.msk.bf16.vlgmr.msra.gmra.mxu0 %vm367_vm1, %v790_v2  ;;  %v4225_v2 = vld [vmem:[%s5600_s3 + $0x64] ss:$16 sps:$4 sm:$0xff]   ;;  %v4228_v3 = vld [vmem:[%s5600_s3 + $0x6c] ss:$16 sps:$4 sm:$0xff]   ;;  %v4223_v5 = vld [vmem:[%s5600_s3 + $0x60] ss:$16 sps:$4 sm:$0xff]  }
 0x4cc   :  { %v695_v6 = vpop.f32.mrf.mxu1  ;;  %1230 = vmatprep.mubr.bf16.mxu0 %v4504_v27  ;;  %1199 = vmatpush1.bf16.msra.mxu0 %v4199_v14 }
 0x4cd   :  { %1200 = vmatprep.subr.bf16.mxu0 %v4207_v52  ;;  %v4226_v6 = vld [vmem:[%s5600_s3 + $0x68] ss:$16 sps:$4 sm:$0xff]  }
 0x4ce   :  { %v3995_v8 = vpop.f32.mrf.mxu1  ;;  %v4255_v52 = vld [vmem:[%s5601_s4 + $0x68] sm:$0xff]  }
 0x4cf   :  { %v4231_v8 = vld [vmem:[%s5600_s3 + $0x44] ss:$16 sps:$4 sm:$0xff]  }
 0x4d0   :  { %1201 = vmatpush1.bf16.msra.mxu0 %v4205_v54  ;;  %v4257_v54 = vld [vmem:[%s5601_s4 + $0x28] sm:$0xff]  }
 0x4d1   :  { %1202 = vmatprep.subr.bf16.mxu0 %v4213_v56  ;;  %v4259_v56 = vld [vmem:[%s5601_s4 + $0x60] sm:$0xff]  }
 0x4d4   :  { %1203 = vmatpush1.bf16.msra.mxu0 %v4211_v60  ;;  %v4261_v60 = vld [vmem:[%s5601_s4 + $0x20] sm:$0xff]  }
 0x4d5   :  { %1204 = vmatprep.subr.bf16.mxu0 %v4219_v63  ;;  %v4264_v63 = vld [vmem:[%s5601_s4 + $0xd8] sm:$0xff]  }
 0x4d8   :  { %1205 = vmatpush1.bf16.msra.mxu0 %v4217_v62  ;;  %v4263_v62 = vld [vmem:[%s5601_s4 + $0x58] sm:$0xff]  }
 0x4d9   :  { %1206 = vmatprep.subr.bf16.mxu0 %v4225_v2  ;;  %v4267_v2 = vld [vmem:[%s5601_s4 + $0x50] sm:$0xff]  }
 0x4dc   :  { %1207 = vmatpush1.bf16.msra.mxu0 %v4223_v5  ;;  %v4269_v5 = vld [vmem:[%s5601_s4 + $0x10] sm:$0xff]  }
 0x4dd   :  { %1208 = vmatprep.subr.bf16.mxu0 %v4231_v8  ;;  %v4271_v8 = vld [vmem:[%s5601_s4 + $0x48] sm:$0xff]  }
 0x53f   :  { %v738_v10 = vpop.f32.mrf.mxu0 }
 0x540   :  { %v784_v11 = vpop.f32.mrf.mxu1 }
 0x541   :  { %v873_v12 = vpack.c.bf16 %v784_v11, %v738_v10  ;;  %v4000_v13 = vpop.f32.mrf.mxu0  ;;  %v4234_v10 = vld [vmem:[%s5600_s3 + $0x4c] ss:$16 sps:$4 sm:$0xff]   ;;  %v4229_v11 = vld [vmem:[%s5600_s3 + $0x40] ss:$16 sps:$4 sm:$0xff]  }
 0x542   :  { %v4006_v15 = vpop.f32.mrf.mxu1  ;;  %v4237_v13 = vld [vmem:[%s5600_s3 + $0x24] ss:$16 sps:$4 sm:$0xff]   ;;  %1209 = vmatpush1.bf16.msra.mxu0 %v4229_v11  ;;  %v4273_v11 = vld [vmem:[%s5601_s4 + $0x8] sm:$0xff]  }
 0x543   :  { %4029 = vmatmul.mubr.msk.bf16.vlgmr.msra.gmra.mxu1 %vm367_vm1, %v873_v12  ;;  %v741_v16 = vpop.f32.mrf.mxu0  ;;  %v4232_v12 = vld [vmem:[%s5600_s3 + $0x48] ss:$16 sps:$4 sm:$0xff]   ;;  %v4240_v15 = vld [vmem:[%s5600_s3 + $0x2c] ss:$16 sps:$4 sm:$0xff]   ;;  %1210 = vmatprep.subr.bf16.mxu0 %v4237_v13  ;;  %v4275_v13 = vld [vmem:[%s5601_s4 + $0x40] sm:$0xff]  }
 0x544   :  { %v787_v17 = vpop.f32.mrf.mxu1  ;;  %1273 = vmatprep.mubr.bf16.mxu1 %v4504_v27  ;;  %1242 = vmatpush1.bf16.msra.mxu1 %v4202_v38  ;;  %v4235_v16 = vld [vmem:[%s5600_s3 + $0x20] ss:$16 sps:$4 sm:$0xff]  }
 0x545   :  { %v4001_v18 = vpop.f32.mrf.mxu0  ;;  %1243 = vmatprep.subr.bf16.mxu1 %v4210_v53  ;;  %v4238_v17 = vld [vmem:[%s5600_s3 + $0x28] ss:$16 sps:$4 sm:$0xff]  }
 0x546   :  { %v4007_v19 = vpop.f32.mrf.mxu1  ;;  %v4243_v18 = vld [vmem:[%s5600_s3 + $0x4] ss:$16 sps:$4 sm:$0xff]   ;;  %1211 = vmatpush1.bf16.msra.mxu0 %v4235_v16  ;;  %v4256_v53 = vld [vmem:[%s5601_s4 + $0xe8] sm:$0xff]  }
 0x547   :  { %v4246_v19 = vld [vmem:[%s5600_s3 + $0xc] ss:$16 sps:$4 sm:$0xff]   ;;  %1212 = vmatprep.subr.bf16.mxu0 %v4243_v18  ;;  %v4277_v16 = vld [vmem:[%s5601_s4] sm:$0xff]   ;;  %v5006_v18 = vsub.s32 2, %v4642_v43 }
 0x548   :  { %1244 = vmatpush1.bf16.msra.mxu1 %v4208_v55  ;;  %v4258_v55 = vld [vmem:[%s5601_s4 + $0xa8] sm:$0xff]  }
 0x549   :  { %1245 = vmatprep.subr.bf16.mxu1 %v4216_v57  ;;  %v4260_v57 = vld [vmem:[%s5601_s4 + $0xe0] sm:$0xff]  }
 0x54c   :  { %1246 = vmatpush1.bf16.msra.mxu1 %v4214_v61  ;;  %v4262_v61 = vld [vmem:[%s5601_s4 + $0xa0] sm:$0xff]  }
 0x54d   :  { %1247 = vmatprep.subr.bf16.mxu1 %v4222_v1  ;;  %v4266_v1 = vld [vmem:[%s5601_s4 + $0x98] sm:$0xff]  }
 0x550   :  { %1248 = vmatpush1.bf16.msra.mxu1 %v4220_v0  ;;  %v4265_v0 = vld [vmem:[%s5601_s4 + $0x18] sm:$0xff]  }
 0x551   :  { %1249 = vmatprep.subr.bf16.mxu1 %v4228_v3  ;;  %v4268_v3 = vld [vmem:[%s5601_s4 + $0xd0] sm:$0xff]  }
 0x554   :  { %1250 = vmatpush1.bf16.msra.mxu1 %v4226_v6  ;;  %v4270_v6 = vld [vmem:[%s5601_s4 + $0x90] sm:$0xff]  }
 0x555   :  { %1251 = vmatprep.subr.bf16.mxu1 %v4234_v10  ;;  %v4272_v10 = vld [vmem:[%s5601_s4 + $0xc8] sm:$0xff]  }
 0x558   :  { %1252 = vmatpush1.bf16.msra.mxu1 %v4232_v12  ;;  %v4274_v12 = vld [vmem:[%s5601_s4 + $0x88] sm:$0xff]  }
 0x559   :  { %1253 = vmatprep.subr.bf16.mxu1 %v4240_v15  ;;  %v4276_v15 = vld [vmem:[%s5601_s4 + $0xc0] sm:$0xff]  }
 0x55c   :  { %1254 = vmatpush1.bf16.msra.mxu1 %v4238_v17  ;;  %v4278_v17 = vld [vmem:[%s5601_s4 + $0x80] sm:$0xff]  }
 0x55d   :  { %1255 = vmatprep.subr.bf16.mxu1 %v4246_v19  ;;  %v1025_v19 = vrot.slane %v4650_v45, %v5006_v18 }
 0x58b   :  { %v860_v20 = vpop.f32.mrf.mxu0 }
 0x58c   :  { %v871_v26 = vadd.f32 %v870_v25, %v860_v20  ;;  %v4241_v20 = vld [vmem:[%s5600_s3] ss:$16 sps:$4 sm:$0xff]  }
 0x58d   :  { %v4018_v21 = vpop.f32.mrf.mxu0  ;;  %1213 = vmatpush1.bf16.msra.mxu0 %v4241_v20  ;;  %v1033_v20 = vrot.slane %v4670_v58, %v5006_v18 }
 0x58e   :  { %v4244_v21 = vld [vmem:[%s5600_s3 + $0x8] ss:$16 sps:$4 sm:$0xff]  }
 0x58f   :  { %v863_v22 = vpop.f32.mrf.mxu0  ;;  %1256 = vmatpush1.bf16.msra.mxu1 %v4244_v21  ;;  %v1029_v21 = vrot.slane %v4658_v49, %v5006_v18 }
 0x590   :  { %v872_v31 = vadd.f32 %v870_v25, %v863_v22 }
 0x591   :  { %v4019_v23 = vpop.f32.mrf.mxu0 }
 0x603   :  { %v944_v28 = vpop.f32.mrf.mxu1 }
 0x604   :  { %v951_v29 = vadd.f32 %v944_v28, %v871_v26 }
 0x605   :  { %v4030_v30 = vpop.f32.mrf.mxu1 }
 0x606   :  { %v4787_v33 = vadd.f32 %v4479_v32, %v951_v29 }
 0x607   :  { %v947_v34 = vpop.f32.mrf.mxu1 }
 0x608   :  { %v952_v35 = vadd.f32 %v947_v34, %v872_v31  ;;  %955 = vadd.xlane.f32.xlu1 %v4787_v33  ;;  %v980_v31 = vrot.slane %v4658_v49, %v4780_v24 }
 0x609   :  { %v4031_v36 = vpop.f32.mrf.mxu1 }
 0x60a   :  { %v4793_v9 = vadd.f32 %v4480_v7, %v952_v35  ;;  %v986_v35 = vrot.slane %v4670_v58, %v4780_v24 }
 0x60c   :  { %957 = vadd.xlane.f32.xlu1 %v4793_v9 }
 0x691   :  { %v956_v40 = vpop.xlane.xlu1 %955 }
 0x692   :  { %v959_v41 = vmul.f32 0.0078125, %v956_v40  ;;  %v4247_v40 = vld [vmem:[%s5601_s4 + $0x78] sm:$0xff]  }
 0x693   :  { %3817 = vmatprep.subr.bf16.mxu0 %v4247_v40 }
 0x694   :  { %v4809_v42 = vsub.f32 %v4787_v33, %v959_v41  ;;  %v4248_v41 = vld [vmem:[%s5601_s4 + $0xf8] sm:$0xff]  }
 0x695   :  { %v958_v46 = vpop.xlane.xlu1 %957  ;;  %3839 = vmatprep.subr.bf16.mxu1 %v4248_v41 }
 0x696   :  { %v960_v47 = vmul.f32 0.0078125, %v958_v46  ;;  %v963_v48 = vmul.f32 %v4809_v42, %v4809_v42  ;;  %v4250_v46 = vld [vmem:[%s5601_s4 + $0xb8] sm:$0xff]  }
 0x698   :  { %v4814_v50 = vsub.f32 %v4793_v9, %v960_v47  ;;  %965 = vadd.xlane.f32.xlu1 %v963_v48  ;;  %v4251_v47 = vld [vmem:[%s5601_s4 + $0x70] sm:$0xff]  }
 0x699   :  { %v4252_v48 = vld [vmem:[%s5601_s4 + $0xf0] sm:$0xff]  }
 0x69a   :  { %v964_v51 = vmul.f32 %v4814_v50, %v4814_v50 }
 0x69c   :  { %967 = vadd.xlane.f32.xlu1 %v964_v51  ;;  %v4254_v51 = vld [vmem:[%s5601_s4 + $0xb0] sm:$0xff]  }
 0x721   :  { %v966_v22 = vpop.xlane.xlu1 %965 }
 0x722   :  { %v969_v23 = vmul.f32 0.0078125, %v966_v22  ;;  %v1037_v22 = vrot.slane %v4675_v59, %v5006_v18 }
 0x724   :  { %v971_v25 = vadd.f32 1e-12, %v969_v23 }
 0x725   :  { %v968_v26 = vpop.xlane.xlu1 %967 }
 0x726   :  { %4419 = vrsqrt.f32 %v971_v25  ;;  %v970_v28 = vmul.f32 0.0078125, %v968_v26 }
 0x728   :  { %v972_v29 = vadd.f32 1e-12, %v970_v28 }
 0x72a   :  { %4421 = vrsqrt.f32 %v972_v29 }
 0x733   :  { %v4420_v30 = vpop.eup %4419 }
 0x734   :  { %v975_v32 = vmul.f32 %v4420_v30, %v4809_v42  ;;  %v4249_v42 = vld [vmem:[%s5601_s4 + $0x38] sm:$0xff]  }
 0x736   :  { %v981_v7 = vmul.f32 %v980_v31, %v975_v32 }
 0x737   :  { %v4422_v34 = vpop.eup %4421 }
 0x738   :  { %v976_v36 = vmul.f32 %v4422_v34, %v4814_v50  ;;  %v987_v37 = vadd.f32 %v986_v35, %v981_v7  ;;  %v4253_v50 = vld [vmem:[%s5601_s4 + $0x30] sm:$0xff]  }
 0x73a   :  { %v982_v14 = vmul.f32 %v980_v31, %v976_v36 }
 0x73c   :  { %v988_v38 = vadd.f32 %v986_v35, %v982_v14 }
 0x73e   :  { %v989_v39 = vpack.c.bf16 %v988_v38, %v987_v37 }
 0x740   :  { %1231 = vmatmul.mubr.bf16.vlgmr.msra.gmra.mxu0 %v989_v39  ;;  %1274 = vmatmul.mubr.bf16.vlgmr.msra.gmra.mxu1 %v989_v39 }
 0x741   :  { %3818 = vmatpush3.bf16.msra.mxu0 %v4249_v42  ;;  %3840 = vmatpush3.bf16.msra.mxu1 %v4250_v46 }
 0x742   :  { %3819 = vmatprep.subr.bf16.mxu0 %v4251_v47  ;;  %3841 = vmatprep.subr.bf16.mxu1 %v4252_v48 }
 0x745   :  { %3820 = vmatpush3.bf16.msra.mxu0 %v4253_v50  ;;  %3842 = vmatpush3.bf16.msra.mxu1 %v4254_v51 }
 0x746   :  { %3821 = vmatprep.subr.bf16.mxu0 %v4255_v52  ;;  %3843 = vmatprep.subr.bf16.mxu1 %v4256_v53 }
 0x749   :  { %3822 = vmatpush3.bf16.msra.mxu0 %v4257_v54  ;;  %3844 = vmatpush3.bf16.msra.mxu1 %v4258_v55 }
 0x74a   :  { %3823 = vmatprep.subr.bf16.mxu0 %v4259_v56  ;;  %3845 = vmatprep.subr.bf16.mxu1 %v4260_v57 }
 0x74d   :  { %3824 = vmatpush3.bf16.msra.mxu0 %v4261_v60  ;;  %3846 = vmatpush3.bf16.msra.mxu1 %v4262_v61 }
 0x74e   :  { %3825 = vmatprep.subr.bf16.mxu0 %v4263_v62  ;;  %3847 = vmatprep.subr.bf16.mxu1 %v4264_v63 }
 0x751   :  { %3826 = vmatpush3.bf16.msra.mxu0 %v4265_v0  ;;  %3848 = vmatpush3.bf16.msra.mxu1 %v4266_v1 }
 0x752   :  { %3827 = vmatprep.subr.bf16.mxu0 %v4267_v2  ;;  %3849 = vmatprep.subr.bf16.mxu1 %v4268_v3 }
 0x755   :  { %3828 = vmatpush3.bf16.msra.mxu0 %v4269_v5  ;;  %3850 = vmatpush3.bf16.msra.mxu1 %v4270_v6 }
 0x756   :  { %3829 = vmatprep.subr.bf16.mxu0 %v4271_v8  ;;  %3851 = vmatprep.subr.bf16.mxu1 %v4272_v10 }
 0x759   :  { %3830 = vmatpush3.bf16.msra.mxu0 %v4273_v11  ;;  %3852 = vmatpush3.bf16.msra.mxu1 %v4274_v12 }
 0x75a   :  { %3831 = vmatprep.subr.bf16.mxu0 %v4275_v13  ;;  %3853 = vmatprep.subr.bf16.mxu1 %v4276_v15 }
 0x75d   :  { %3832 = vmatpush3.bf16.msra.mxu0 %v4277_v16  ;;  %3854 = vmatpush3.bf16.msra.mxu1 %v4278_v17 }
 0x75e   :  { %4032 = vmatprep.subr.bf16.mxu1 %v4503_v4 }
 0x800   :  { %v1232_v23 = vpop.f32.mrf.mxu0  ;;  %v1275_v25 = vpop.f32.mrf.mxu1 }
 0x801   :  { %v5016_v26 = vadd.f32 %v1232_v23, %v1025_v19  ;;  %v5018_v28 = vadd.f32 %v1275_v25, %v1033_v20 }
 0x802   :  { %v1234_v43 = vpop.f32.mrf.mxu0  ;;  %v1277_v29 = vpop.f32.mrf.mxu1 }
 0x803   :  { %v1284_v45 = vmul.f32 %v5016_v26, %v5016_v26  ;;  %v1286_v58 = vmul.f32 %v5018_v28, %v5018_v28  ;;  %v5024_v30 = vadd.f32 %v1234_v43, %v1029_v21  ;;  %v5026_v49 = vadd.f32 %v1277_v29, %v1037_v22 }
 0x804   :  { %v1236_v31 = vpop.f32.mrf.mxu0  ;;  %v1279_v32 = vpop.f32.mrf.mxu1 }
 0x805   :  { %v1292_v34 = vmul.f32 %v1284_v45, %v5016_v26  ;;  %v1294_v35 = vmul.f32 %v1286_v58, %v5018_v28  ;;  %v1285_v36 = vmul.f32 %v5024_v30, %v5024_v30  ;;  %v1287_v7 = vmul.f32 %v5026_v49, %v5026_v49 }
 0x806   :  { %v5034_v14 = vadd.f32 %v1236_v31, %v1025_v19  ;;  %v5036_v37 = vadd.f32 %v1279_v32, %v1033_v20  ;;  %v1238_v38 = vpop.f32.mrf.mxu0  ;;  %v1281_v39 = vpop.f32.mrf.mxu1 }
 0x807   :  { %v1300_v40 = vmul.f32 0.044715, %v1292_v34  ;;  %v1302_v41 = vmul.f32 0.044715, %v1294_v35  ;;  %v1293_v42 = vmul.f32 %v1285_v36, %v5024_v30  ;;  %v1295_v46 = vmul.f32 %v1287_v7, %v5026_v49 }
 0x808   :  { %v1288_v47 = vmul.f32 %v5034_v14, %v5034_v14  ;;  %v1290_v48 = vmul.f32 %v5036_v37, %v5036_v37  ;;  %v5044_v50 = vadd.f32 %v1238_v38, %v1029_v21  ;;  %v5046_v51 = vadd.f32 %v1281_v39, %v1037_v22 }
 0x809   :  { %v1308_v52 = vadd.f32 %v1300_v40, %v5016_v26  ;;  %v1310_v53 = vadd.f32 %v1302_v41, %v5018_v28  ;;  %v1301_v54 = vmul.f32 0.044715, %v1293_v42  ;;  %v1303_v55 = vmul.f32 0.044715, %v1295_v46 }
 0x80a   :  { %v1296_v56 = vmul.f32 %v1288_v47, %v5034_v14  ;;  %v1298_v57 = vmul.f32 %v1290_v48, %v5036_v37  ;;  %v1289_v60 = vmul.f32 %v5044_v50, %v5044_v50  ;;  %v1291_v61 = vmul.f32 %v5046_v51, %v5046_v51 }
 0x80b   :  { %v1316_v62 = vmul.f32 0.7978846, %v1308_v52  ;;  %v1318_v63 = vmul.f32 0.7978846, %v1310_v53  ;;  %v1309_v0 = vadd.f32 %v1301_v54, %v5024_v30  ;;  %v1311_v1 = vadd.f32 %v1303_v55, %v5026_v49 }
 0x80c   :  { %v1304_v2 = vmul.f32 0.044715, %v1296_v56  ;;  %v1306_v3 = vmul.f32 0.044715, %v1298_v57  ;;  %v1297_v5 = vmul.f32 %v1289_v60, %v5044_v50  ;;  %v1299_v6 = vmul.f32 %v1291_v61, %v5046_v51 }
 0x80d   :  { %4423 = vtanh.f32 %v1316_v62  ;;  %v1317_v8 = vmul.f32 0.7978846, %v1309_v0  ;;  %v1319_v10 = vmul.f32 0.7978846, %v1311_v1 }
 0x80e   :  { %4425 = vtanh.f32 %v1318_v63  ;;  %v1312_v11 = vadd.f32 %v1304_v2, %v5034_v14  ;;  %v1314_v12 = vadd.f32 %v1306_v3, %v5036_v37  ;;  %v1305_v13 = vmul.f32 0.044715, %v1297_v5 }
 0x80f   :  { %4427 = vtanh.f32 %v1317_v8  ;;  %v1307_v15 = vmul.f32 0.044715, %v1299_v6 }
 0x810   :  { %4429 = vtanh.f32 %v1319_v10  ;;  %v1320_v16 = vmul.f32 0.7978846, %v1312_v11  ;;  %v1322_v17 = vmul.f32 0.7978846, %v1314_v12  ;;  %v1313_v19 = vadd.f32 %v1305_v13, %v5044_v50 }
 0x811   :  { %v1315_v20 = vadd.f32 %v1307_v15, %v5046_v51 }
 0x812   :  { %4431 = vtanh.f32 %v1320_v16  ;;  %v1321_v21 = vmul.f32 0.7978846, %v1313_v19 }
 0x813   :  { %4433 = vtanh.f32 %v1322_v17  ;;  %v1323_v22 = vmul.f32 0.7978846, %v1315_v20 }
 0x814   :  { %4435 = vtanh.f32 %v1321_v21  ;;  %v4279_v21 = vld [vmem:[%s5598_s1 + $0x168] ss:$12 sps:$4 sm:$0xff]  }
 0x815   :  { %4437 = vtanh.f32 %v1323_v22  ;;  %v4281_v22 = vld [vmem:[%s5598_s1 + $0x16c] ss:$12 sps:$4 sm:$0xff]  }
 0x816   :  { %1905 = vmatprep.subr.bf16.mxu0 %v4281_v22 }
 0x81a   :  { %v4424_v23 = vpop.eup %4423 }
 0x81b   :  { %v4426_v25 = vpop.eup %4425  ;;  %v1332_v31 = vadd.f32 1.0, %v4424_v23 }
 0x81c   :  { %v4428_v43 = vpop.eup %4427  ;;  %v1334_v35 = vadd.f32 1.0, %v4426_v25 }
 0x81d   :  { %v4430_v29 = vpop.eup %4429  ;;  %v1333_v45 = vadd.f32 1.0, %v4428_v43  ;;  %v1340_v46 = vmul.f32 0.5, %v1332_v31 }
 0x81e   :  { %v1335_v32 = vadd.f32 1.0, %v4430_v29  ;;  %v1342_v53 = vmul.f32 0.5, %v1334_v35  ;;  %v4286_v35 = vld [vmem:[%s5598_s1 + $0x158] ss:$12 sps:$4 sm:$0xff]  }
 0x81f   :  { %v4432_v58 = vpop.eup %4431  ;;  %v1341_v42 = vmul.f32 0.5, %v1333_v45  ;;  %v1348_v62 = vmul.f32 %v1340_v46, %v5016_v26  ;;  %v4295_v46 = vld [vmem:[%s5598_s1 + $0x108] ss:$12 sps:$4 sm:$0xff]  }
 0x820   :  { %v4434_v34 = vpop.eup %4433  ;;  %v1336_v36 = vadd.f32 1.0, %v4432_v58  ;;  %v1343_v52 = vmul.f32 0.5, %v1335_v32  ;;  %v1350_v1 = vmul.f32 %v1342_v53, %v5018_v28  ;;  %v4285_v32 = vld [vmem:[%s5598_s1 + $0x154] ss:$12 sps:$4 sm:$0xff]   ;;  %v4302_v53 = vld [vmem:[%s5598_s1 + $0xf8] ss:$12 sps:$4 sm:$0xff]  }
 0x821   :  { %v4436_v7 = vpop.eup %4435  ;;  %v1338_v38 = vadd.f32 1.0, %v4434_v34  ;;  %v1349_v60 = vmul.f32 %v1341_v42, %v5024_v30  ;;  %v4283_v34 = vld [vmem:[%s5598_s1 + $0x150] ss:$12 sps:$4 sm:$0xff]   ;;  %v4297_v42 = vld [vmem:[%s5598_s1 + $0x10c] ss:$12 sps:$4 sm:$0xff]  }
 0x822   :  { %v4438_v39 = vpop.eup %4437  ;;  %v1344_v40 = vmul.f32 0.5, %v1336_v36  ;;  %v1337_v41 = vadd.f32 1.0, %v4436_v7  ;;  %v1351_v63 = vmul.f32 %v1343_v52, %v5026_v49  ;;  %v1427_v49 = vrot.slane %v4675_v59, %v4780_v24  ;;  %v4289_v36 = vld [vmem:[%s5598_s1 + $0x13c] ss:$12 sps:$4 sm:$0xff]   ;;  %v4287_v7 = vld [vmem:[%s5598_s1 + $0x138] ss:$12 sps:$4 sm:$0xff]  }
 0x823   :  { %v1346_v47 = vmul.f32 0.5, %v1338_v38  ;;  %v1339_v48 = vadd.f32 1.0, %v4438_v39  ;;  %v4290_v38 = vld [vmem:[%s5598_s1 + $0x140] ss:$12 sps:$4 sm:$0xff]   ;;  %v4299_v52 = vld [vmem:[%s5598_s1 + $0xf0] ss:$12 sps:$4 sm:$0xff]  }
 0x824   :  { %v1345_v54 = vmul.f32 0.5, %v1337_v41  ;;  %v1352_v55 = vmul.f32 %v1344_v40, %v5034_v14  ;;  %v4291_v39 = vld [vmem:[%s5598_s1 + $0x120] ss:$12 sps:$4 sm:$0xff]   ;;  %v4293_v40 = vld [vmem:[%s5598_s1 + $0x124] ss:$12 sps:$4 sm:$0xff]  }
 0x825   :  { %v1347_v56 = vmul.f32 0.5, %v1339_v48  ;;  %v1354_v57 = vmul.f32 %v1346_v47, %v5036_v37  ;;  %v4294_v41 = vld [vmem:[%s5598_s1 + $0x128] ss:$12 sps:$4 sm:$0xff]   ;;  %v4298_v47 = vld [vmem:[%s5598_s1 + $0x110] ss:$12 sps:$4 sm:$0xff]  }
 0x826   :  { %v1353_v61 = vmul.f32 %v1345_v54, %v5044_v50  ;;  %v1356_v5 = vpack.c.bf16 %v1352_v55, %v1348_v62  ;;  %v4301_v48 = vld [vmem:[%s5598_s1 + $0xf4] ss:$12 sps:$4 sm:$0xff]   ;;  %v4305_v54 = vld [vmem:[%s5598_s1 + $0xdc] ss:$12 sps:$4 sm:$0xff]   ;;  %v4303_v55 = vld [vmem:[%s5598_s1 + $0xd8] ss:$12 sps:$4 sm:$0xff]  }
 0x827   :  { %v1355_v0 = vmul.f32 %v1347_v56, %v5046_v51  ;;  %v1358_v14 = vpack.c.bf16 %v1354_v57, %v1350_v1  ;;  %v4306_v56 = vld [vmem:[%s5598_s1 + $0xe0] ss:$12 sps:$4 sm:$0xff]   ;;  %v4309_v57 = vld [vmem:[%s5598_s1 + $0xc4] ss:$12 sps:$4 sm:$0xff]  }
 0x828   :  { %v1357_v2 = vpack.c.bf16 %v1353_v61, %v1349_v60  ;;  %v4307_v60 = vld [vmem:[%s5598_s1 + $0xc0] ss:$12 sps:$4 sm:$0xff]   ;;  %v4310_v61 = vld [vmem:[%s5598_s1 + $0xc8] ss:$12 sps:$4 sm:$0xff]  }
 0x829   :  { %v1359_v3 = vpack.c.bf16 %v1355_v0, %v1351_v63 }
 0x82a   :  { %1652 = vmatprep.mubr.bf16.mxu0 %v1357_v2 }
 0x82b   :  { %1693 = vmatprep.mubr.bf16.mxu1 %v1359_v3  ;;  %1653 = vmatmul.mubr.bf16.vlgmr.msra.gmra.mxu0 %v1356_v5  ;;  %v5179_v5 = vld [vmem:[%s5602_s5 + $0x20] sm:$0xff] }
 0x82c   :  { %1694 = vmatmul.mubr.bf16.vlgmr.msra.gmra.mxu1 %v1358_v14  ;;  %1937 = vmatprep.mubr.bf16.mxu0 %v4504_v27 }
 0x82d   :  { %4048 = vmatprep.mubr.msk.bf16.mxu1 %vm4505_vm0, %v4503_v4  ;;  %1906 = vmatpush1.bf16.msra.mxu0 %v4279_v21 }
 0x82e   :  { %1907 = vmatprep.subr.bf16.mxu0 %v4285_v32 }
 0x831   :  { %1908 = vmatpush1.bf16.msra.mxu0 %v4283_v34 }
 0x832   :  { %1909 = vmatprep.subr.bf16.mxu0 %v4289_v36 }
 0x835   :  { %1910 = vmatpush1.bf16.msra.mxu0 %v4287_v7 }
 0x836   :  { %1911 = vmatprep.subr.bf16.mxu0 %v4293_v40 }
 0x839   :  { %1912 = vmatpush1.bf16.msra.mxu0 %v4291_v39 }
 0x83a   :  { %1913 = vmatprep.subr.bf16.mxu0 %v4297_v42 }
 0x83d   :  { %1914 = vmatpush1.bf16.msra.mxu0 %v4295_v46 }
 0x83e   :  { %1915 = vmatprep.subr.bf16.mxu0 %v4301_v48 }
 0x841   :  { %1916 = vmatpush1.bf16.msra.mxu0 %v4299_v52 }
 0x842   :  { %1917 = vmatprep.subr.bf16.mxu0 %v4305_v54 }
 0x845   :  { %1918 = vmatpush1.bf16.msra.mxu0 %v4303_v55 }
 0x846   :  { %1919 = vmatprep.subr.bf16.mxu0 %v4309_v57 }
 0x849   :  { %1920 = vmatpush1.bf16.msra.mxu0 %v4307_v60 }
 0x84a   :  { %4052 = vmatprep.subr.bf16.mxu0 %v4503_v4 }
 0x8eb   :  { %v3833_v26 = vpop.f32.mrf.mxu0 }
 0x8ec   :  { %v3855_v30 = vpop.f32.mrf.mxu1 }
 0x8ed   :  { %v3834_v37 = vpop.f32.mrf.mxu0 }
 0x8ee   :  { %v3835_v28 = vadd.f32 %v3834_v37, %v3833_v26  ;;  %v3856_v50 = vpop.f32.mrf.mxu1 }
 0x8ef   :  { %v3836_v51 = vpop.f32.mrf.mxu0  ;;  %v3857_v8 = vadd.f32 %v3856_v50, %v3855_v30  ;;  %v1734_v30 = vrot.slane %v5179_v5, %v4645_v44 }
 0x8f0   :  { %v1655_v6 = vadd.f32 %v3835_v28, %v1427_v49  ;;  %v3858_v10 = vpop.f32.mrf.mxu1 }
 0x8f1   :  { %v3837_v11 = vpop.f32.mrf.mxu0 }
 0x8f2   :  { %v1696_v12 = vadd.f32 %v3857_v8, %v1655_v6  ;;  %v3838_v13 = vadd.f32 %v3837_v11, %v3836_v51  ;;  %v3859_v15 = vpop.f32.mrf.mxu1 }
 0x8f3   :  { %v3860_v17 = vadd.f32 %v3859_v15, %v3858_v10 }
 0x8f4   :  { %v1658_v16 = vadd.f32 %v3838_v13, %v1427_v49  ;;  %v5078_v19 = vadd.f32 %v1696_v12, %v4787_v33  ;;  %v4282_v33 = vld [vmem:[%s5598_s1 + $0x170] ss:$12 sps:$4 sm:$0xff]   ;;  %v5187_v49 = vld [vmem:[%s5602_s5 + $0x28] sm:$0xff] }
 0x8f5   :  { %4033 = vmatpush3.bf16.msra.mxu1 %v4282_v33  ;;  %v1740_v51 = vrot.slane %v5187_v49, %v4645_v44  ;;  %v5199_v12 = vld [vmem:[%s5602_s5 + $0x38] sm:$0xff]  ;;  %v5204_v13 = vld [vmem:[%s5602_s5 + $0x30] sm:$0xff] }
 0x8f6   :  { %v1699_v20 = vadd.f32 %v3860_v17, %v1658_v16  ;;  %1709 = vadd.xlane.f32.xlu1 %v5078_v19  ;;  %4034 = vmatprep.subr.bf16.mxu1 %v4503_v4  ;;  %v1998_v17 = vrot.slane %v5199_v12, %v4645_v44  ;;  %v1992_v22 = vrot.slane %v5204_v13, %v4645_v44 }
 0x8f8   :  { %v5082_v59 = vadd.f32 %v1699_v20, %v4793_v9 }
 0x8f9   :  { %4035 = vmatpush3.bf16.msra.mxu1 %v4286_v35 }
 0x8fa   :  { %1711 = vadd.xlane.f32.xlu1 %v5082_v59  ;;  %4036 = vmatprep.subr.bf16.mxu1 %v4503_v4 }
 0x8fd   :  { %4037 = vmatpush3.bf16.msra.mxu1 %v4290_v38 }
 0x8fe   :  { %4038 = vmatprep.subr.bf16.mxu1 %v4503_v4 }
 0x901   :  { %4039 = vmatpush3.bf16.msra.mxu1 %v4294_v41 }
 0x902   :  { %4040 = vmatprep.subr.bf16.mxu1 %v4503_v4 }
 0x905   :  { %4041 = vmatpush3.bf16.msra.mxu1 %v4298_v47 }
 0x906   :  { %4042 = vmatprep.subr.bf16.mxu1 %v4503_v4 }
 0x909   :  { %4043 = vmatpush3.bf16.msra.mxu1 %v4302_v53 }
 0x90a   :  { %4044 = vmatprep.subr.bf16.mxu1 %v4503_v4 }
 0x90d   :  { %4045 = vmatpush3.bf16.msra.mxu1 %v4306_v56 }
 0x90e   :  { %4046 = vmatprep.subr.bf16.mxu1 %v4503_v4 }
 0x911   :  { %4047 = vmatpush3.bf16.msra.mxu1 %v4310_v61 }
 0x912   :  { %4058 = vmatprep.subr.bf16.mxu1 %v4503_v4 }
 0x97f   :  { %v1710_v9 = vpop.xlane.xlu1 %1709 }
 0x980   :  { %v1713_v23 = vmul.f32 0.0078125, %v1710_v9 }
 0x982   :  { %v5096_v25 = vsub.f32 %v5078_v19, %v1713_v23 }
 0x983   :  { %v1712_v43 = vpop.xlane.xlu1 %1711 }
 0x984   :  { %v1714_v29 = vmul.f32 0.0078125, %v1712_v43  ;;  %v1717_v45 = vmul.f32 %v5096_v25, %v5096_v25 }
 0x986   :  { %v5101_v58 = vsub.f32 %v5082_v59, %v1714_v29  ;;  %1719 = vadd.xlane.f32.xlu0 %v1717_v45 }
 0x988   :  { %v1718_v31 = vmul.f32 %v5101_v58, %v5101_v58 }
 0x98a   :  { %1721 = vadd.xlane.f32.xlu1 %v1718_v31 }
 0xa0f   :  { %v1720_v62 = vpop.xlane.xlu0 %1719 }
 0xa10   :  { %v1723_v63 = vmul.f32 0.0078125, %v1720_v62 }
 0xa12   :  { %v1725_v0 = vadd.f32 1e-12, %v1723_v63 }
 0xa13   :  { %v1722_v1 = vpop.xlane.xlu1 %1721 }
 0xa14   :  { %4439 = vrsqrt.f32 %v1725_v0  ;;  %v1724_v2 = vmul.f32 0.0078125, %v1722_v1 }
 0xa16   :  { %v1726_v3 = vadd.f32 1e-12, %v1724_v2 }
 0xa18   :  { %4441 = vrsqrt.f32 %v1726_v3 }
 0xa21   :  { %v4440_v14 = vpop.eup %4439 }
 0xa22   :  { %v1729_v26 = vmul.f32 %v4440_v14, %v5096_v25 }
 0xa24   :  { %v1735_v50 = vmul.f32 %v1734_v30, %v1729_v26 }
 0xa25   :  { %v4442_v37 = vpop.eup %4441 }
 0xa26   :  { %v1730_v28 = vmul.f32 %v4442_v37, %v5101_v58  ;;  %v1741_v8 = vadd.f32 %v1740_v51, %v1735_v50 }
 0xa28   :  { %v1736_v6 = vmul.f32 %v1734_v30, %v1730_v28 }
 0xa2a   :  { %v1742_v10 = vadd.f32 %v1740_v51, %v1736_v6 }
 0xa2c   :  { %v1743_v11 = vpack.c.bf16 %v1742_v10, %v1741_v8 }
 0xa2e   :  { %1938 = vmatmul.mubr.bf16.vlgmr.msra.gmra.mxu0 %v1743_v11  ;;  %4049 = vmatmul.mubr.bf16.vlgmr.msra.gmra.mxu1 %v1743_v11 }
 0xa2f   :  { %4054 = vmatprep.mubr.msk.bf16.mxu0 %vm4505_vm0, %v4503_v4  ;;  %4060 = vmatprep.mubr.msk.bf16.mxu1 %vm4505_vm0, %v4503_v4 }
 0xaee   :  { %v1939_v15 = vpop.f32.mrf.mxu0  ;;  %v1982_v16 = vpop.f32.mrf.mxu1 }
 0xaef   :  { %v5210_v25 = vadd.f32 %v1998_v17, %v1982_v16  ;;  %v1993_v31 = vadd.f32 %v1992_v22, %v1939_v15 }
 0xaf0   :  { %v1941_v20 = vpop.f32.mrf.mxu0  ;;  %v4050_v21 = vpop.f32.mrf.mxu1 }
 0xaf1   :  { %v2021_v33 = vpack.c.bf16 %v1941_v20, %v1941_v20  ;;  %v2009_v7 = vpack.c.bf16 %v1993_v31, %v1993_v31  ;;  %v2033_v56 = vpack.c.bf16 %v5210_v25, %v5210_v25 }
 0xaf2   :  { %v1943_v9 = vpop.f32.mrf.mxu0  ;;  %v1985_v23 = vpop.f32.mrf.mxu1 }
 0xaf3   :  { %v5212_v43 = vadd.f32 %v1998_v17, %v1985_v23  ;;  %v2041_v29 = vsel %vm367_vm1, %v2021_v33, 0  ;;  %v1994_v34 = vadd.f32 %v1992_v22, %v1943_v9  ;;  %v2277_v62 = vsel %vm608_vm2, %v2033_v56, 0 }
 0xaf4   :  { %v1945_v45 = vpop.f32.mrf.mxu0  ;;  %v4051_v58 = vpop.f32.mrf.mxu1  ;;  %4053 = vmatpush3.bf16.xpose.msra.mxu0 %v2041_v29 }
 0xaf5   :  { %v4154_v32 = vpack.i.bf16 %v5212_v43, %v5210_v25  ;;  %4064 = vmatprep.subr.bf16.mxu0 %v4503_v4  ;;  %v4144_v44 = vpack.i.bf16 %v1945_v45, %v1941_v20  ;;  %v2022_v35 = vpack.c.bf16 %v1945_v45, %v1945_v45  ;;  %v4149_v38 = vpack.i.bf16 %v1994_v34, %v1993_v31 }
 0xaf6   :  { %v2010_v39 = vpack.c.bf16 %v1994_v34, %v1994_v34  ;;  %v2034_v57 = vpack.c.bf16 %v5212_v43, %v5212_v43 }
 0xaf7   :  { %4145 = vrot.lane.b32.xlu1 %v4144_v44, %s4506_s9  ;;  %v2087_v36 = vsel %vm367_vm1, %v2022_v35, 0 }
 0xaf8   :  { %4059 = vmatpush3.bf16.xpose.msra.mxu1 %v2087_v36  ;;  %v2323_v63 = vsel %vm608_vm2, %v2034_v57, 0 }
 0xaf9   :  { %4070 = vmatprep.subr.bf16.mxu1 %v4503_v4 }
 0xafb   :  { %4055 = vmatmul.mubr.msk.bf16.vlgmr.msra.gmra.mxu0 %vm367_vm1, %v2009_v7  ;;  %4150 = vrot.lane.b32.xlu1 %v4149_v38, %s4506_s9 }
 0xafc   :  { %4066 = vmatprep.mubr.msk.bf16.mxu0 %vm4505_vm0, %v4503_v4 }
 0xaff   :  { %4061 = vmatmul.mubr.msk.bf16.vlgmr.msra.gmra.mxu1 %vm367_vm1, %v2010_v39 }
 0xb00   :  { %4072 = vmatprep.mubr.msk.bf16.mxu1 %vm4505_vm0, %v4503_v4 }
 0xb69   :  { %v4146_v40 = vpop.permute.xlu1 %4145 }
 0xb6a   :  { %v4148_v41 = vunpack.i.h.bf16 %v4146_v40  ;;  %v4147_v42 = vunpack.i.l.bf16 %v4146_v40 }
 0xb6c   :  { %v2024_v46 = vpack.c.bf16 %v4148_v41, %v4148_v41  ;;  %v2023_v47 = vpack.c.bf16 %v4147_v42, %v4147_v42 }
 0xb6d   :  { %v4151_v48 = vpop.permute.xlu1 %4150 }
 0xb6e   :  { %v2133_v52 = vsel %vm367_vm1, %v2023_v47, 0  ;;  %v2179_v53 = vsel %vm367_vm1, %v2024_v46, 0  ;;  %v4153_v54 = vunpack.i.h.bf16 %v4151_v48  ;;  %v4152_v55 = vunpack.i.l.bf16 %v4151_v48 }
 0xb6f   :  { %4065 = vmatpush3.bf16.xpose.msra.mxu0 %v2133_v52  ;;  %4071 = vmatpush3.bf16.xpose.msra.mxu1 %v2179_v53 }
 0xb70   :  { %4076 = vmatprep.subr.bf16.mxu0 %v4503_v4  ;;  %4082 = vmatprep.subr.bf16.mxu1 %v4503_v4  ;;  %v2012_v60 = vpack.c.bf16 %v4153_v54, %v4153_v54  ;;  %v2011_v61 = vpack.c.bf16 %v4152_v55, %v4152_v55 }
 0xb76   :  { %4067 = vmatmul.mubr.msk.bf16.vlgmr.msra.gmra.mxu0 %vm367_vm1, %v2011_v61  ;;  %4073 = vmatmul.mubr.msk.bf16.vlgmr.msra.gmra.mxu1 %vm367_vm1, %v2012_v60 }
 0xb77   :  { %4077 = vmatpush3.bf16.msra.mxu0 %v2277_v62  ;;  %4083 = vmatpush3.bf16.msra.mxu1 %v2323_v63 }
 0xb78   :  { %4078 = vmatprep.mubr.msk.bf16.mxu0 %vm4505_vm0, %v4503_v4  ;;  %4084 = vmatprep.mubr.msk.bf16.mxu1 %vm4505_vm0, %v4503_v4 }
 0xb79   :  { %4088 = vmatprep.subr.bf16.mxu0 %v4503_v4  ;;  %4094 = vmatprep.subr.bf16.mxu1 %v4503_v4 }
 0xbbb   :  { %v2077_v0 = vpop.f32.mrf.mxu0 }
 0xbbc   :  { %v2221_v1 = vmul.f32 0.125, %v2077_v0 }
 0xbbd   :  { %v4056_v2 = vpop.f32.mrf.mxu0 }
 0xbbe   :  { %v2225_v3 = vsel %vm556_vm3, %v2221_v1, -inf }
 0xbbf   :  { %2226 = vmax.xlane.f32.xlu1 %v2225_v3  ;;  %v2080_v14 = vpop.f32.mrf.mxu0  ;;  %v2123_v26 = vpop.f32.mrf.mxu1 }
 0xbc0   :  { %v2222_v30 = vmul.f32 0.125, %v2123_v26 }
 0xbc1   :  { %v4057_v37 = vpop.f32.mrf.mxu0  ;;  %v4062_v28 = vpop.f32.mrf.mxu1 }
 0xbc2   :  { %v2228_v50 = vsel %vm556_vm3, %v2222_v30, -inf }
 0xbc3   :  { %2229 = vmax.xlane.f32.xlu0 %v2228_v50  ;;  %v2126_v51 = vpop.f32.mrf.mxu1  ;;  %v4311_v50 = vld [vmem:[%s5599_s2 + $0x58] sm:$0xff]  }
 0xbc5   :  { %v4063_v6 = vpop.f32.mrf.mxu1 }
 0xc36   :  { %v2169_v8 = vpop.f32.mrf.mxu0  ;;  %v2215_v10 = vpop.f32.mrf.mxu1 }
 0xc37   :  { %v2223_v11 = vmul.f32 0.125, %v2169_v8  ;;  %v2224_v17 = vmul.f32 0.125, %v2215_v10  ;;  %v4312_v10 = vld [vmem:[%s5599_s2 + $0x50] sm:$0xff]  }
 0xc38   :  { %v4068_v15 = vpop.f32.mrf.mxu0  ;;  %v4074_v16 = vpop.f32.mrf.mxu1 }
 0xc39   :  { %v2231_v20 = vsel %vm556_vm3, %v2223_v11, -inf  ;;  %v2234_v23 = vsel %vm556_vm3, %v2224_v17, -inf  ;;  %v4313_v16 = vld [vmem:[%s5599_s2 + $0x48] sm:$0xff]  }
 0xc3a   :  { %v2172_v21 = vpop.f32.mrf.mxu0  ;;  %2232 = vmax.xlane.f32.xlu0 %v2231_v20  ;;  %v2218_v22 = vpop.f32.mrf.mxu1  ;;  %v4314_v20 = vld [vmem:[%s5599_s2 + $0x40] sm:$0xff]  }
 0xc3b   :  { %v4317_v21 = vld [vmem:[%s5599_s2 + $0x68] sm:$0xff]   ;;  %v4318_v22 = vld [vmem:[%s5599_s2 + $0x60] sm:$0xff]  }
 0xc3c   :  { %v4069_v33 = vpop.f32.mrf.mxu0  ;;  %v4075_v9 = vpop.f32.mrf.mxu1 }
 0xc3e   :  { %2235 = vmax.xlane.f32.xlu0 %v2234_v23 }
 0xc48   :  { %v2227_v29 = vpop.xlane.xlu1 %2226 }
 0xc49   :  { %v2237_v45 = vsub.f32 %v2221_v1, %v2227_v29 }
 0xc4b   :  { %v2241_v58 = vmul.f32 1.442695, %v2237_v45 }
 0xc4c   :  { %v2230_v31 = vpop.xlane.xlu0 %2229 }
 0xc4d   :  { %4443 = vpow2.f32 %v2241_v58  ;;  %v2238_v34 = vsub.f32 %v2222_v30, %v2230_v31 }
 0xc4f   :  { %v2243_v44 = vmul.f32 1.442695, %v2238_v34 }
 0xc51   :  { %4445 = vpow2.f32 %v2243_v44 }
 0xc5a   :  { %v4444_v35 = vpop.eup %4443 }
 0xc5b   :  { %v2249_v36 = vsel %vm556_vm3, %v4444_v35, 0.0 }
 0xc5c   :  { %2250 = vadd.xlane.f32.xlu0 %v2249_v36 }
 0xc5e   :  { %v4446_v7 = vpop.eup %4445 }
 0xc5f   :  { %v2252_v38 = vsel %vm556_vm3, %v4446_v7, 0.0 }
 0xc60   :  { %2253 = vadd.xlane.f32.xlu0 %v2252_v38 }
 0xcc3   :  { %v2233_v39 = vpop.xlane.xlu0 %2232 }
 0xcc4   :  { %v2239_v40 = vsub.f32 %v2223_v11, %v2233_v39  ;;  %v4315_v11 = vld [vmem:[%s5599_s2 + $0x78] sm:$0xff]  }
 0xcc6   :  { %v2245_v41 = vmul.f32 1.442695, %v2239_v40 }
 0xcc7   :  { %v2236_v42 = vpop.xlane.xlu0 %2235 }
 0xcc8   :  { %4447 = vpow2.f32 %v2245_v41  ;;  %v2240_v46 = vsub.f32 %v2224_v17, %v2236_v42  ;;  %v4316_v17 = vld [vmem:[%s5599_s2 + $0x70] sm:$0xff]  }
 0xcca   :  { %v2247_v47 = vmul.f32 1.442695, %v2240_v46 }
 0xccc   :  { %4449 = vpow2.f32 %v2247_v47 }
 0xcd5   :  { %v4448_v48 = vpop.eup %4447 }
 0xcd6   :  { %v2255_v52 = vsel %vm556_vm3, %v4448_v48, 0.0 }
 0xcd7   :  { %2256 = vadd.xlane.f32.xlu0 %v2255_v52 }
 0xcd9   :  { %v4450_v53 = vpop.eup %4449 }
 0xcda   :  { %v2258_v54 = vsel %vm556_vm3, %v4450_v53, 0.0 }
 0xcdb   :  { %2259 = vadd.xlane.f32.xlu0 %v2258_v54 }
 0xce5   :  { %v2251_v55 = vpop.xlane.xlu0 %2250 }
 0xce6   :  { %4451 = vrcp.f32 %v2251_v55 }
 0xce9   :  { %v2254_v56 = vpop.xlane.xlu0 %2253 }
 0xcea   :  { %4453 = vrcp.f32 %v2254_v56 }
 0xcf1   :  { %4155 = vrot.lane.b32.xlu0 %v4154_v32, %s4506_s9 }
 0xcf3   :  { %v4452_v57 = vpop.eup %4451 }
 0xcf4   :  { %v2262_v60 = vmul.f32 %v4452_v57, %v4444_v35 }
 0xcf6   :  { %v2269_v61 = vpack.c.bf16 %v2262_v60, %v2262_v60 }
 0xcf7   :  { %v4454_v62 = vpop.eup %4453 }
 0xcf8   :  { %4079 = vmatmul.mubr.msk.bf16.vlgmr.msra.gmra.mxu0 %vm556_vm3, %v2269_v61  ;;  %v2264_v63 = vmul.f32 %v4454_v62, %v4446_v7 }
 0xcf9   :  { %4090 = vmatprep.mubr.msk.bf16.mxu0 %vm4505_vm0, %v4503_v4 }
 0xcfa   :  { %v2270_v0 = vpack.c.bf16 %v2264_v63, %v2264_v63 }
 0xcfc   :  { %4085 = vmatmul.mubr.msk.bf16.vlgmr.msra.gmra.mxu1 %vm556_vm3, %v2270_v0 }
 0xcfd   :  { %4096 = vmatprep.mubr.msk.bf16.mxu1 %vm4505_vm0, %v4503_v4 }
 0xd60   :  { %v2257_v1 = vpop.xlane.xlu0 %2256 }
 0xd61   :  { %4455 = vrcp.f32 %v2257_v1  ;;  %v4319_v1 = vld [vmem:[%s5600_s3 + $0x1e0] ss:$16 sps:$4 sm:$0xff]  }
 0xd64   :  { %v2260_v25 = vpop.xlane.xlu0 %2259 }
 0xd65   :  { %4457 = vrcp.f32 %v2260_v25  ;;  %v4321_v25 = vld [vmem:[%s5600_s3 + $0x1e4] ss:$16 sps:$4 sm:$0xff]  }
 0xd68   :  { %v4156_v43 = vpop.permute.xlu0 %4155 }
 0xd69   :  { %v4158_v32 = vunpack.i.h.bf16 %v4156_v43  ;;  %v4157_v2 = vunpack.i.l.bf16 %v4156_v43  ;;  %v4324_v43 = vld [vmem:[%s5600_s3 + $0x1ec] ss:$16 sps:$4 sm:$0xff]  }
 0xd6b   :  { %v2036_v3 = vpack.c.bf16 %v4158_v32, %v4158_v32  ;;  %v2035_v14 = vpack.c.bf16 %v4157_v2, %v4157_v2 }
 0xd6d   :  { %v2415_v26 = vsel %vm608_vm2, %v2036_v3, 0  ;;  %v2369_v30 = vsel %vm608_vm2, %v2035_v14, 0 }
 0xd6e   :  { %v4456_v37 = vpop.eup %4455  ;;  %4089 = vmatpush3.bf16.msra.mxu0 %v2369_v30  ;;  %4095 = vmatpush3.bf16.msra.mxu1 %v2415_v26 }
 0xd6f   :  { %v2266_v28 = vmul.f32 %v4456_v37, %v4448_v48  ;;  %4100 = vmatprep.subr.bf16.mxu0 %v4503_v4  ;;  %4112 = vmatprep.subr.bf16.mxu1 %v4503_v4 }
 0xd71   :  { %v2271_v51 = vpack.c.bf16 %v2266_v28, %v2266_v28  ;;  %v4327_v28 = vld [vmem:[%s5600_s3 + $0x1c4] ss:$16 sps:$4 sm:$0xff]  }
 0xd72   :  { %v4458_v6 = vpop.eup %4457 }
 0xd73   :  { %4091 = vmatmul.mubr.msk.bf16.vlgmr.msra.gmra.mxu0 %vm556_vm3, %v2271_v51  ;;  %v2268_v8 = vmul.f32 %v4458_v6, %v4450_v53  ;;  %v2538_v53 = vrot.slane %v5179_v5, %v4780_v24  ;;  %v4325_v51 = vld [vmem:[%s5600_s3 + $0x1c0] ss:$16 sps:$4 sm:$0xff]   ;;  %v4328_v6 = vld [vmem:[%s5600_s3 + $0x1c8] ss:$16 sps:$4 sm:$0xff]  }
 0xd74   :  { %4101 = vmatpush3.bf16.msra.mxu0 %v4311_v50  ;;  %4108 = vmatprep.mubr.msk.bf16.mxu0 %vm4505_vm0, %v4503_v4  ;;  %v4330_v50 = vld [vmem:[%s5600_s3 + $0x1cc] ss:$16 sps:$4 sm:$0xff]  }
 0xd75   :  { %v2272_v15 = vpack.c.bf16 %v2268_v8, %v2268_v8  ;;  %4102 = vmatprep.subr.bf16.mxu0 %v4503_v4  ;;  %v4333_v8 = vld [vmem:[%s5600_s3 + $0x1a4] ss:$16 sps:$4 sm:$0xff]  }
 0xd77   :  { %4097 = vmatmul.mubr.msk.bf16.vlgmr.msra.gmra.mxu1 %vm556_vm3, %v2272_v15  ;;  %v4334_v15 = vld [vmem:[%s5600_s3 + $0x1a8] ss:$16 sps:$4 sm:$0xff]  }
 0xd78   :  { %4103 = vmatpush3.bf16.msra.mxu0 %v4312_v10  ;;  %4113 = vmatpush3.bf16.msra.mxu1 %v4315_v11  ;;  %v4336_v10 = vld [vmem:[%s5600_s3 + $0x1ac] ss:$16 sps:$4 sm:$0xff]   ;;  %v4331_v11 = vld [vmem:[%s5600_s3 + $0x1a0] ss:$16 sps:$4 sm:$0xff]  }
 0xd79   :  { %4104 = vmatprep.subr.bf16.mxu0 %v4503_v4  ;;  %4114 = vmatprep.subr.bf16.mxu1 %v4503_v4 }
 0xd7a   :  { %4120 = vmatprep.mubr.msk.bf16.mxu1 %vm4505_vm0, %v4503_v4 }
 0xd7c   :  { %4105 = vmatpush3.bf16.msra.mxu0 %v4313_v16  ;;  %4115 = vmatpush3.bf16.msra.mxu1 %v4316_v17  ;;  %v4337_v16 = vld [vmem:[%s5600_s3 + $0x180] ss:$16 sps:$4 sm:$0xff]   ;;  %v4339_v17 = vld [vmem:[%s5600_s3 + $0x184] ss:$16 sps:$4 sm:$0xff]  }
 0xd7d   :  { %4106 = vmatprep.subr.bf16.mxu0 %v4503_v4  ;;  %4116 = vmatprep.subr.bf16.mxu1 %v4503_v4 }
 0xd80   :  { %4107 = vmatpush3.bf16.msra.mxu0 %v4314_v20  ;;  %4117 = vmatpush3.bf16.msra.mxu1 %v4317_v21  ;;  %v4340_v20 = vld [vmem:[%s5600_s3 + $0x188] ss:$16 sps:$4 sm:$0xff]   ;;  %v4342_v21 = vld [vmem:[%s5600_s3 + $0x18c] ss:$16 sps:$4 sm:$0xff]  }
 0xd81   :  { %4118 = vmatprep.subr.bf16.mxu1 %v4503_v4  ;;  %2867 = vmatprep.subr.bf16.mxu0 %v4321_v25  ;;  %v4367_v25 = vld [vmem:[%s5601_s4 + $0x178] sm:$0xff]  }
 0xd84   :  { %4119 = vmatpush3.bf16.msra.mxu1 %v4318_v22  ;;  %v4345_v22 = vld [vmem:[%s5600_s3 + $0x164] ss:$16 sps:$4 sm:$0xff]  }
 0xd85   :  { %2910 = vmatprep.subr.bf16.mxu1 %v4324_v43  ;;  %v4369_v43 = vld [vmem:[%s5601_s4 + $0x138] sm:$0xff]  }
 0xdb8   :  { %v2313_v33 = vpop.f32.mrf.mxu0 }
 0xdba   :  { %v4080_v9 = vpop.f32.mrf.mxu0 }
 0xdbb   :  { %v4343_v9 = vld [vmem:[%s5600_s3 + $0x160] ss:$16 sps:$4 sm:$0xff]  }
 0xdbc   :  { %v2316_v23 = vpop.f32.mrf.mxu0  ;;  %v2359_v29 = vpop.f32.mrf.mxu1 }
 0xdbd   :  { %v2457_v45 = vpack.c.bf16 %v2359_v29, %v2313_v33  ;;  %v4348_v33 = vld [vmem:[%s5600_s3 + $0x16c] ss:$16 sps:$4 sm:$0xff]   ;;  %v4346_v23 = vld [vmem:[%s5600_s3 + $0x168] ss:$16 sps:$4 sm:$0xff]   ;;  %v4351_v29 = vld [vmem:[%s5600_s3 + $0x144] ss:$16 sps:$4 sm:$0xff]  }
 0xdbe   :  { %v4081_v58 = vpop.f32.mrf.mxu0  ;;  %v4086_v31 = vpop.f32.mrf.mxu1 }
 0xdbf   :  { %4109 = vmatmul.mubr.msk.bf16.vlgmr.msra.gmra.mxu0 %vm367_vm1, %v2457_v45  ;;  %v4354_v45 = vld [vmem:[%s5600_s3 + $0x14c] ss:$16 sps:$4 sm:$0xff]   ;;  %v4349_v58 = vld [vmem:[%s5600_s3 + $0x140] ss:$16 sps:$4 sm:$0xff]   ;;  %v4352_v31 = vld [vmem:[%s5600_s3 + $0x148] ss:$16 sps:$4 sm:$0xff]  }
 0xdc0   :  { %v2362_v34 = vpop.f32.mrf.mxu1  ;;  %2899 = vmatprep.mubr.bf16.mxu0 %v4504_v27  ;;  %2868 = vmatpush1.bf16.msra.mxu0 %v4319_v1 }
 0xdc1   :  { %2869 = vmatprep.subr.bf16.mxu0 %v4327_v28  ;;  %v4357_v34 = vld [vmem:[%s5600_s3 + $0x124] ss:$16 sps:$4 sm:$0xff]   ;;  %v4378_v28 = vld [vmem:[%s5601_s4 + $0x1a8] sm:$0xff]  }
 0xdc2   :  { %v4087_v44 = vpop.f32.mrf.mxu1 }
 0xdc3   :  { %v4360_v44 = vld [vmem:[%s5600_s3 + $0x12c] ss:$16 sps:$4 sm:$0xff]  }
 0xdc4   :  { %2870 = vmatpush1.bf16.msra.mxu0 %v4325_v51  ;;  %v4380_v51 = vld [vmem:[%s5601_s4 + $0x1e0] sm:$0xff]  }
 0xdc5   :  { %2871 = vmatprep.subr.bf16.mxu0 %v4333_v8  ;;  %v4382_v8 = vld [vmem:[%s5601_s4 + $0x1a0] sm:$0xff]  }
 0xdc8   :  { %2872 = vmatpush1.bf16.msra.mxu0 %v4331_v11  ;;  %v4384_v11 = vld [vmem:[%s5601_s4 + $0x1d8] sm:$0xff]  }
 0xdc9   :  { %2873 = vmatprep.subr.bf16.mxu0 %v4339_v17  ;;  %v4387_v17 = vld [vmem:[%s5601_s4 + $0x150] sm:$0xff]  }
 0xdcc   :  { %2874 = vmatpush1.bf16.msra.mxu0 %v4337_v16  ;;  %v4386_v16 = vld [vmem:[%s5601_s4 + $0x198] sm:$0xff]  }
 0xdcd   :  { %2875 = vmatprep.subr.bf16.mxu0 %v4345_v22  ;;  %v4390_v22 = vld [vmem:[%s5601_s4 + $0x190] sm:$0xff]  }
 0xdd0   :  { %2876 = vmatpush1.bf16.msra.mxu0 %v4343_v9  ;;  %v4392_v9 = vld [vmem:[%s5601_s4 + $0x1c8] sm:$0xff]  }
 0xdd1   :  { %2877 = vmatprep.subr.bf16.mxu0 %v4351_v29  ;;  %v4394_v29 = vld [vmem:[%s5601_s4 + $0x188] sm:$0xff]  }
 0xdd4   :  { %2878 = vmatpush1.bf16.msra.mxu0 %v4349_v58  ;;  %v4396_v58 = vld [vmem:[%s5601_s4 + $0x1c0] sm:$0xff]  }
 0xdd5   :  { %2879 = vmatprep.subr.bf16.mxu0 %v4357_v34  ;;  %v4398_v34 = vld [vmem:[%s5601_s4 + $0x180] sm:$0xff]  }
 0xe33   :  { %v2405_v35 = vpop.f32.mrf.mxu0 }
 0xe35   :  { %v4092_v4 = vpop.f32.mrf.mxu0 }
 0xe36   :  { %v4358_v4 = vld [vmem:[%s5600_s3 + $0x128] ss:$16 sps:$4 sm:$0xff]  }
 0xe37   :  { %v2408_v36 = vpop.f32.mrf.mxu0  ;;  %v2451_v7 = vpop.f32.mrf.mxu1 }
 0xe38   :  { %v2541_v38 = vpack.c.bf16 %v2451_v7, %v2405_v35  ;;  %v4355_v35 = vld [vmem:[%s5600_s3 + $0x120] ss:$16 sps:$4 sm:$0xff]   ;;  %v4363_v36 = vld [vmem:[%s5600_s3 + $0x104] ss:$16 sps:$4 sm:$0xff]   ;;  %v4366_v7 = vld [vmem:[%s5600_s3 + $0x10c] ss:$16 sps:$4 sm:$0xff]  }
 0xe39   :  { %v4093_v39 = vpop.f32.mrf.mxu0  ;;  %v4098_v40 = vpop.f32.mrf.mxu1  ;;  %2880 = vmatpush1.bf16.msra.mxu0 %v4355_v35  ;;  %v2702_v35 = vrot.slane %v5204_v13, %v5006_v18 }
 0xe3a   :  { %4121 = vmatmul.mubr.msk.bf16.vlgmr.msra.gmra.mxu1 %vm367_vm1, %v2541_v38  ;;  %v4361_v38 = vld [vmem:[%s5600_s3 + $0x100] ss:$16 sps:$4 sm:$0xff]   ;;  %2881 = vmatprep.subr.bf16.mxu0 %v4363_v36  ;;  %v4364_v39 = vld [vmem:[%s5600_s3 + $0x108] ss:$16 sps:$4 sm:$0xff]   ;;  %v2706_v36 = vrot.slane %v5199_v12, %v5006_v18 }
 0xe3b   :  { %v2454_v41 = vpop.f32.mrf.mxu1  ;;  %2942 = vmatprep.mubr.bf16.mxu1 %v4504_v27 }
 0xe3d   :  { %v4099_v42 = vpop.f32.mrf.mxu1  ;;  %2882 = vmatpush1.bf16.msra.mxu0 %v4361_v38 }
 0xe3e   :  { %3896 = vmatprep.subr.bf16.mxu0 %v4367_v25 }
 0xe7f   :  { %v2528_v46 = vpop.f32.mrf.mxu0 }
 0xe80   :  { %v2539_v54 = vadd.f32 %v2538_v53, %v2528_v46 }
 0xe81   :  { %v4110_v47 = vpop.f32.mrf.mxu0 }
 0xe83   :  { %v2531_v48 = vpop.f32.mrf.mxu0 }
 0xe84   :  { %v2540_v60 = vadd.f32 %v2538_v53, %v2531_v48 }
 0xe85   :  { %v4111_v52 = vpop.f32.mrf.mxu0 }
 0xefa   :  { %v2612_v55 = vpop.f32.mrf.mxu1 }
 0xefb   :  { %v2619_v56 = vadd.f32 %v2612_v55, %v2539_v54  ;;  %v2648_v54 = vrot.slane %v5187_v49, %v4780_v24 }
 0xefc   :  { %v4122_v57 = vpop.f32.mrf.mxu1 }
 0xefd   :  { %v5311_v61 = vadd.f32 %v2619_v56, %v5078_v19  ;;  %v4322_v19 = vld [vmem:[%s5600_s3 + $0x1e8] ss:$16 sps:$4 sm:$0xff]   ;;  %v2654_v56 = vrot.slane %v5204_v13, %v4780_v24 }
 0xefe   :  { %v2615_v62 = vpop.f32.mrf.mxu1  ;;  %2911 = vmatpush1.bf16.msra.mxu1 %v4322_v19  ;;  %v4368_v19 = vld [vmem:[%s5601_s4 + $0x1f8] sm:$0xff]  }
 0xeff   :  { %v2620_v63 = vadd.f32 %v2615_v62, %v2540_v60  ;;  %2623 = vadd.xlane.f32.xlu1 %v5311_v61  ;;  %2912 = vmatprep.subr.bf16.mxu1 %v4330_v50  ;;  %v4379_v50 = vld [vmem:[%s5601_s4 + $0x160] sm:$0xff]  }
 0xf00   :  { %v4123_v27 = vpop.f32.mrf.mxu1 }
 0xf01   :  { %v5315_v0 = vadd.f32 %v2620_v63, %v5082_v59 }
 0xf02   :  { %2913 = vmatpush1.bf16.msra.mxu1 %v4328_v6  ;;  %v4381_v6 = vld [vmem:[%s5601_s4 + $0x120] sm:$0xff]  }
 0xf03   :  { %2625 = vadd.xlane.f32.xlu1 %v5315_v0  ;;  %2914 = vmatprep.subr.bf16.mxu1 %v4336_v10  ;;  %v4383_v10 = vld [vmem:[%s5601_s4 + $0x158] sm:$0xff]  }
 0xf06   :  { %2915 = vmatpush1.bf16.msra.mxu1 %v4334_v15  ;;  %v4385_v15 = vld [vmem:[%s5601_s4 + $0x118] sm:$0xff]  }
 0xf07   :  { %2916 = vmatprep.subr.bf16.mxu1 %v4342_v21  ;;  %v4389_v21 = vld [vmem:[%s5601_s4 + $0x110] sm:$0xff]  }
 0xf0a   :  { %2917 = vmatpush1.bf16.msra.mxu1 %v4340_v20  ;;  %v4388_v20 = vld [vmem:[%s5601_s4 + $0x1d0] sm:$0xff]  }
 0xf0b   :  { %2918 = vmatprep.subr.bf16.mxu1 %v4348_v33  ;;  %v4391_v33 = vld [vmem:[%s5601_s4 + $0x148] sm:$0xff]  }
 0xf0e   :  { %2919 = vmatpush1.bf16.msra.mxu1 %v4346_v23  ;;  %v4393_v23 = vld [vmem:[%s5601_s4 + $0x108] sm:$0xff]  }
 0xf0f   :  { %2920 = vmatprep.subr.bf16.mxu1 %v4354_v45  ;;  %v4395_v45 = vld [vmem:[%s5601_s4 + $0x140] sm:$0xff]  }
 0xf12   :  { %2921 = vmatpush1.bf16.msra.mxu1 %v4352_v31  ;;  %v4397_v31 = vld [vmem:[%s5601_s4 + $0x100] sm:$0xff]  }
 0xf13   :  { %2922 = vmatprep.subr.bf16.mxu1 %v4360_v44  ;;  %v2694_v44 = vrot.slane %v5179_v5, %v5006_v18 }
 0xf16   :  { %2923 = vmatpush1.bf16.msra.mxu1 %v4358_v4  ;;  %v2698_v4 = vrot.slane %v5187_v49, %v5006_v18 }
 0xf17   :  { %2924 = vmatprep.subr.bf16.mxu1 %v4366_v7 }
 0xf1a   :  { %2925 = vmatpush1.bf16.msra.mxu1 %v4364_v39 }
 0xf1b   :  { %3918 = vmatprep.subr.bf16.mxu1 %v4368_v19 }
 0xf88   :  { %v2624_v59 = vpop.xlane.xlu1 %2623 }
 0xf89   :  { %v2627_v32 = vmul.f32 0.0078125, %v2624_v59  ;;  %v4370_v59 = vld [vmem:[%s5601_s4 + $0x1b8] sm:$0xff]  }
 0xf8b   :  { %v5331_v2 = vsub.f32 %v5311_v61, %v2627_v32  ;;  %v4371_v32 = vld [vmem:[%s5601_s4 + $0x170] sm:$0xff]  }
 0xf8c   :  { %v2626_v3 = vpop.xlane.xlu1 %2625 }
 0xf8d   :  { %v2628_v14 = vmul.f32 0.0078125, %v2626_v3  ;;  %v2631_v26 = vmul.f32 %v5331_v2, %v5331_v2  ;;  %v4373_v3 = vld [vmem:[%s5601_s4 + $0x130] sm:$0xff]  }
 0xf8f   :  { %v5336_v30 = vsub.f32 %v5315_v0, %v2628_v14  ;;  %2633 = vadd.xlane.f32.xlu1 %v2631_v26  ;;  %v4374_v14 = vld [vmem:[%s5601_s4 + $0x1b0] sm:$0xff]   ;;  %v4375_v26 = vld [vmem:[%s5601_s4 + $0x168] sm:$0xff]  }
 0xf91   :  { %v2632_v37 = vmul.f32 %v5336_v30, %v5336_v30 }
 0xf93   :  { %2635 = vadd.xlane.f32.xlu1 %v2632_v37  ;;  %v4377_v37 = vld [vmem:[%s5601_s4 + $0x128] sm:$0xff]  }
0x1018   :  { %v2634_v40 = vpop.xlane.xlu1 %2633 }
0x1019   :  { %v2637_v41 = vmul.f32 0.0078125, %v2634_v40 }
0x101b   :  { %v2639_v42 = vadd.f32 1e-12, %v2637_v41 }
0x101c   :  { %v2636_v46 = vpop.xlane.xlu1 %2635 }
0x101d   :  { %4459 = vrsqrt.f32 %v2639_v42  ;;  %v2638_v47 = vmul.f32 0.0078125, %v2636_v46 }
0x101f   :  { %v2640_v48 = vadd.f32 1e-12, %v2638_v47 }
0x1021   :  { %4461 = vrsqrt.f32 %v2640_v48 }
0x102a   :  { %v4460_v52 = vpop.eup %4459 }
0x102b   :  { %v2643_v53 = vmul.f32 %v4460_v52, %v5331_v2  ;;  %v4372_v2 = vld [vmem:[%s5601_s4 + $0x1f0] sm:$0xff]  }
0x102d   :  { %v2649_v60 = vmul.f32 %v2648_v54, %v2643_v53 }
0x102e   :  { %v4462_v55 = vpop.eup %4461 }
0x102f   :  { %v2644_v57 = vmul.f32 %v4462_v55, %v5336_v30  ;;  %v2655_v63 = vadd.f32 %v2654_v56, %v2649_v60  ;;  %v4376_v30 = vld [vmem:[%s5601_s4 + $0x1e8] sm:$0xff]   ;;  %s4507_s4 = smov [#allocation3]  }
0x1030   :  { %s3406_s9 = sshll.u32 %s4507_s4, 4  ;;  %s3407_s9 = int_to_ptr.vmem [resolvable:$true] %s3406_s9 }
0x1031   :  { %v2650_v62 = vmul.f32 %v2648_v54, %v2644_v57  ;;  %s4481_s21 = scalar_lea.vmem %s3407_s9, 32  ;;  %p4486_p1 = scmp.lt.s32.totalorder %s3407_s9, %s3407_s9 }
0x1032   :  { %p4482_p0 = scmp.ne.s32.totalorder %s3407_s9, %s4481_s21  ;;  %p4487_p2 = scmp.lt.s32.totalorder %s4481_s21, %s4481_s21 }
0x1033   :  { %v2656_v27 = vadd.f32 %v2654_v56, %v2650_v62 }
0x1034   :  { %p4488_p3 = por %p4487_p2, %p4486_p1 }
0x1035   :  { %v2657_v1 = vpack.c.bf16 %v2656_v27, %v2655_v63 }
0x1036   :  { %p4489_p4 = pnand %p4488_p3, %p4482_p0 }
0x1037   :  { %2900 = vmatmul.mubr.bf16.vlgmr.msra.gmra.mxu0 %v2657_v1  ;;  %2943 = vmatmul.mubr.bf16.vlgmr.msra.gmra.mxu1 %v2657_v1 }
0x1038   :  { %3897 = vmatpush3.bf16.msra.mxu0 %v4369_v43  ;;  %3919 = vmatpush3.bf16.msra.mxu1 %v4370_v59 }
0x1039   :  { %3898 = vmatprep.subr.bf16.mxu0 %v4371_v32  ;;  %3920 = vmatprep.subr.bf16.mxu1 %v4372_v2 }
0x103c   :  { %3899 = vmatpush3.bf16.msra.mxu0 %v4373_v3  ;;  %3921 = vmatpush3.bf16.msra.mxu1 %v4374_v14 }
0x103d   :  { %3900 = vmatprep.subr.bf16.mxu0 %v4375_v26  ;;  %3922 = vmatprep.subr.bf16.mxu1 %v4376_v30 }
0x1040   :  { %3901 = vmatpush3.bf16.msra.mxu0 %v4377_v37  ;;  %3923 = vmatpush3.bf16.msra.mxu1 %v4378_v28 }
0x1041   :  { %3902 = vmatprep.subr.bf16.mxu0 %v4379_v50  ;;  %3924 = vmatprep.subr.bf16.mxu1 %v4380_v51 }
0x1044   :  { %3903 = vmatpush3.bf16.msra.mxu0 %v4381_v6  ;;  %3925 = vmatpush3.bf16.msra.mxu1 %v4382_v8 }
0x1045   :  { %3904 = vmatprep.subr.bf16.mxu0 %v4383_v10  ;;  %3926 = vmatprep.subr.bf16.mxu1 %v4384_v11 }
0x1048   :  { %3905 = vmatpush3.bf16.msra.mxu0 %v4385_v15  ;;  %3927 = vmatpush3.bf16.msra.mxu1 %v4386_v16 }
0x1049   :  { %3906 = vmatprep.subr.bf16.mxu0 %v4387_v17  ;;  %3928 = vmatprep.subr.bf16.mxu1 %v4388_v20 }
0x104c   :  { %3907 = vmatpush3.bf16.msra.mxu0 %v4389_v21  ;;  %3929 = vmatpush3.bf16.msra.mxu1 %v4390_v22 }
0x104d   :  { %3908 = vmatprep.subr.bf16.mxu0 %v4391_v33  ;;  %3930 = vmatprep.subr.bf16.mxu1 %v4392_v9 }
0x1050   :  { %3909 = vmatpush3.bf16.msra.mxu0 %v4393_v23  ;;  %3931 = vmatpush3.bf16.msra.mxu1 %v4394_v29 }
0x1051   :  { %3910 = vmatprep.subr.bf16.mxu0 %v4395_v45  ;;  %3932 = vmatprep.subr.bf16.mxu1 %v4396_v58 }
0x1054   :  { %3911 = vmatpush3.bf16.msra.mxu0 %v4397_v31  ;;  %3933 = vmatpush3.bf16.msra.mxu1 %v4398_v34 }
0x10f7   :  { %v2901_v7 = vpop.f32.mrf.mxu0  ;;  %v2944_v38 = vpop.f32.mrf.mxu1 }
0x10f8   :  { %v5534_v39 = vadd.f32 %v2901_v7, %v2694_v44  ;;  %v5536_v40 = vadd.f32 %v2944_v38, %v2702_v35 }
0x10f9   :  { %v2903_v41 = vpop.f32.mrf.mxu0  ;;  %v2946_v42 = vpop.f32.mrf.mxu1 }
0x10fa   :  { %v2953_v5 = vmul.f32 %v5534_v39, %v5534_v39  ;;  %v2955_v13 = vmul.f32 %v5536_v40, %v5536_v40  ;;  %v5542_v46 = vadd.f32 %v2903_v41, %v2698_v4  ;;  %v5544_v49 = vadd.f32 %v2946_v42, %v2706_v36 }
0x10fb   :  { %v2905_v47 = vpop.f32.mrf.mxu0  ;;  %v2948_v18 = vpop.f32.mrf.mxu1 }
0x10fc   :  { %v2961_v48 = vmul.f32 %v2953_v5, %v5534_v39  ;;  %v2963_v52 = vmul.f32 %v2955_v13, %v5536_v40  ;;  %v2954_v53 = vmul.f32 %v5542_v46, %v5542_v46  ;;  %v2956_v54 = vmul.f32 %v5544_v49, %v5544_v49 }
0x10fd   :  { %v5552_v55 = vadd.f32 %v2905_v47, %v2694_v44  ;;  %v5554_v56 = vadd.f32 %v2948_v18, %v2702_v35  ;;  %v2907_v57 = vpop.f32.mrf.mxu0  ;;  %v2950_v60 = vpop.f32.mrf.mxu1 }
0x10fe   :  { %v2969_v62 = vmul.f32 0.044715, %v2961_v48  ;;  %v2971_v63 = vmul.f32 0.044715, %v2963_v52  ;;  %v2962_v27 = vmul.f32 %v2954_v53, %v5542_v46  ;;  %v2964_v1 = vmul.f32 %v2956_v54, %v5544_v49 }
0x10ff   :  { %v2957_v25 = vmul.f32 %v5552_v55, %v5552_v55  ;;  %v2959_v19 = vmul.f32 %v5554_v56, %v5554_v56  ;;  %v5562_v43 = vadd.f32 %v2907_v57, %v2698_v4  ;;  %v5564_v59 = vadd.f32 %v2950_v60, %v2706_v36 }
0x1100   :  { %v2977_v32 = vadd.f32 %v2969_v62, %v5534_v39  ;;  %v2979_v2 = vadd.f32 %v2971_v63, %v5536_v40  ;;  %v2970_v3 = vmul.f32 0.044715, %v2962_v27  ;;  %v2972_v14 = vmul.f32 0.044715, %v2964_v1 }
0x1101   :  { %v2965_v26 = vmul.f32 %v2957_v25, %v5552_v55  ;;  %v2967_v30 = vmul.f32 %v2959_v19, %v5554_v56  ;;  %v2958_v37 = vmul.f32 %v5562_v43, %v5562_v43  ;;  %v2960_v28 = vmul.f32 %v5564_v59, %v5564_v59 }
0x1102   :  { %v2985_v50 = vmul.f32 0.7978846, %v2977_v32  ;;  %v2987_v51 = vmul.f32 0.7978846, %v2979_v2  ;;  %v2978_v6 = vadd.f32 %v2970_v3, %v5542_v46  ;;  %v2980_v8 = vadd.f32 %v2972_v14, %v5544_v49 }
0x1103   :  { %v2973_v10 = vmul.f32 0.044715, %v2965_v26  ;;  %v2975_v11 = vmul.f32 0.044715, %v2967_v30  ;;  %v2966_v15 = vmul.f32 %v2958_v37, %v5562_v43  ;;  %v2968_v16 = vmul.f32 %v2960_v28, %v5564_v59 }
0x1104   :  { %4463 = vtanh.f32 %v2985_v50  ;;  %v2986_v17 = vmul.f32 0.7978846, %v2978_v6  ;;  %v2988_v20 = vmul.f32 0.7978846, %v2980_v8 }
0x1105   :  { %4465 = vtanh.f32 %v2987_v51  ;;  %v2981_v21 = vadd.f32 %v2973_v10, %v5552_v55  ;;  %v2983_v22 = vadd.f32 %v2975_v11, %v5554_v56  ;;  %v2974_v33 = vmul.f32 0.044715, %v2966_v15 }
0x1106   :  { %4467 = vtanh.f32 %v2986_v17  ;;  %v2976_v9 = vmul.f32 0.044715, %v2968_v16 }
0x1107   :  { %4469 = vtanh.f32 %v2988_v20  ;;  %v2989_v23 = vmul.f32 0.7978846, %v2981_v21  ;;  %v2991_v29 = vmul.f32 0.7978846, %v2983_v22  ;;  %v2982_v45 = vadd.f32 %v2974_v33, %v5562_v43 }
0x1108   :  { %v2984_v58 = vadd.f32 %v2976_v9, %v5564_v59 }
0x1109   :  { %4471 = vtanh.f32 %v2989_v23  ;;  %v2990_v31 = vmul.f32 0.7978846, %v2982_v45 }
0x110a   :  { %4473 = vtanh.f32 %v2991_v29  ;;  %v2992_v34 = vmul.f32 0.7978846, %v2984_v58 }
0x110b   :  { %4475 = vtanh.f32 %v2990_v31 }
0x110c   :  { %4477 = vtanh.f32 %v2992_v34 }
0x1111   :  { %v4464_v44 = vpop.eup %4463 }
0x1112   :  { %v4466_v35 = vpop.eup %4465  ;;  %v3001_v41 = vadd.f32 1.0, %v4464_v44 }
0x1113   :  { %v4468_v4 = vpop.eup %4467  ;;  %v3003_v13 = vadd.f32 1.0, %v4466_v35 }
0x1114   :  { %v4470_v36 = vpop.eup %4469  ;;  %v3002_v7 = vadd.f32 1.0, %v4468_v4  ;;  %v3009_v60 = vmul.f32 0.5, %v3001_v41 }
0x1115   :  { %v3004_v42 = vadd.f32 1.0, %v4470_v36  ;;  %v3011_v1 = vmul.f32 0.5, %v3003_v13 }
0x1116   :  { %v4472_v38 = vpop.eup %4471  ;;  %v3010_v57 = vmul.f32 0.5, %v3002_v7  ;;  %v3017_v26 = vmul.f32 %v3009_v60, %v5534_v39 }
0x1117   :  { %v4474_v5 = vpop.eup %4473  ;;  %v3005_v47 = vadd.f32 1.0, %v4472_v38  ;;  %v3012_v27 = vmul.f32 0.5, %v3004_v42  ;;  %v3019_v28 = vmul.f32 %v3011_v1, %v5536_v40 }
0x1118   :  { %v4476_v18 = vpop.eup %4475  ;;  %v3007_v48 = vadd.f32 1.0, %v4474_v5  ;;  %v3018_v3 = vmul.f32 %v3010_v57, %v5542_v46 }
0x1119   :  { %v4478_v52 = vpop.eup %4477  ;;  %v3013_v53 = vmul.f32 0.5, %v3005_v47  ;;  %v3006_v54 = vadd.f32 1.0, %v4476_v18  ;;  %v3020_v30 = vmul.f32 %v3012_v27, %v5544_v49 }
0x111a   :  { %v3015_v62 = vmul.f32 0.5, %v3007_v48  ;;  %v3008_v63 = vadd.f32 1.0, %v4478_v52 }
0x111b   :  { %v3014_v25 = vmul.f32 0.5, %v3006_v54  ;;  %v3021_v19 = vmul.f32 %v3013_v53, %v5552_v55 }
0x111c   :  { %v3016_v32 = vmul.f32 0.5, %v3008_v63  ;;  %v3023_v2 = vmul.f32 %v3015_v62, %v5554_v56 }
0x111d   :  { %v3022_v14 = vmul.f32 %v3014_v25, %v5562_v43  ;;  %v3025_v6 = vpack.c.bf16 %v3021_v19, %v3017_v26  ;;  %v3097_v43 = vrot.slane %v5199_v12, %v4780_v24 }
0x111e   :  { %v3024_v37 = vmul.f32 %v3016_v32, %v5564_v59  ;;  %v3027_v55 = vpack.c.bf16 %v3023_v2, %v3019_v28 }
0x111f   :  { %v3026_v50 = vpack.c.bf16 %v3022_v14, %v3018_v3 }
0x1120   :  { %v3028_v51 = vpack.c.bf16 %v3024_v37, %v3020_v30 }
0x1121   :  { %3322 = vmatprep.mubr.bf16.mxu0 %v3026_v50 }
0x1122   :  { %3363 = vmatprep.mubr.bf16.mxu1 %v3028_v51  ;;  %3323 = vmatmul.mubr.bf16.vlgmr.msra.gmra.mxu0 %v3025_v6 }
0x1123   :  { %3364 = vmatmul.mubr.bf16.vlgmr.msra.gmra.mxu1 %v3027_v55 }
0x11e2   :  { %v3912_v56 = vpop.f32.mrf.mxu0 }
0x11e3   :  { %v3934_v46 = vpop.f32.mrf.mxu1 }
0x11e4   :  { %v3913_v39 = vpop.f32.mrf.mxu0 }
0x11e5   :  { %v3914_v8 = vadd.f32 %v3913_v39, %v3912_v56  ;;  %v3935_v49 = vpop.f32.mrf.mxu1 }
0x11e6   :  { %v3915_v10 = vpop.f32.mrf.mxu0  ;;  %v3936_v11 = vadd.f32 %v3935_v49, %v3934_v46 }
0x11e7   :  { %v3325_v59 = vadd.f32 %v3914_v8, %v3097_v43  ;;  %v3937_v40 = vpop.f32.mrf.mxu1 }
0x11e8   :  { %v3916_v15 = vpop.f32.mrf.mxu0 }
0x11e9   :  { %v3366_v16 = vadd.f32 %v3936_v11, %v3325_v59  ;;  %v3917_v17 = vadd.f32 %v3916_v15, %v3915_v10  ;;  %v3938_v20 = vpop.f32.mrf.mxu1 }
0x11ea   :  { %v3939_v33 = vadd.f32 %v3938_v20, %v3937_v40 }
0x11eb   :  { %v3372_v21 = vadd.f32 %v3366_v16, %v5311_v61  ;;  %v3328_v22 = vadd.f32 %v3917_v17, %v3097_v43 }
0x11ed   :  { %v3379_v9 = vrot.slane %v3372_v21, 4  ;;  %v3369_v23 = vadd.f32 %v3939_v33, %v3328_v22 }
0x11ef   :  { %v3380_v29 = vadd.f32 %v3379_v9, %v3372_v21  ;;  %v3373_v24 = vadd.f32 %v3369_v23, %v5315_v0 }
0x11f1   :  { %v3381_v12 = vrot.slane %v3380_v29, 2  ;;  %v3385_v45 = vrot.slane %v3373_v24, 4 }
0x11f3   :  { %v3382_v58 = vadd.f32 %v3381_v12, %v3380_v29  ;;  %v3386_v31 = vadd.f32 %v3385_v45, %v3373_v24 }
0x11f5   :  { %v3387_v34 = vrot.slane %v3386_v31, 2  ;;  %v3383_v44 = vrot.slane %v3382_v58, 1 }
0x11f7   :  { %v3388_v35 = vadd.f32 %v3387_v34, %v3386_v31  ;;  %v3384_v4 = vadd.f32 %v3383_v44, %v3382_v58 }
0x11f9   :  { %v3389_v36 = vrot.slane %v3388_v35, 1  ;;  %v3392_v61 = vmul.f32 0.125, %v3384_v4 }
0x11fb   :  { %v3390_v7 = vadd.f32 %v3389_v36, %v3388_v35 }
0x11fd   :  { %v3393_v38 = vmul.f32 0.125, %v3390_v7 }
0x11ff   :  { %v3397_v41 = vsel %vm3396_vm4, %v3393_v38, %v3392_v61 }
0x1200   :  { %3399 = vst [vmem:[#allocation3] sm:$0x3] %v3397_v41 }
0x1201   :  { %4492 = shalt.err (!%p4489_p4)
}
0x1202   :  { %3409 = dma.vmem_to_hbm [thread:$0]  %s3407_s9, 32, %s5603_s6, [#allocation4]  }
0x1203   :  { %4501 = dma.done.wait [#allocation4], 32  }
0x1204   :  { %4502 = vsyncadd [#allocation4], 4294967264 }
0x1205   :  { %3413 = vsyncpa [#allocation4], 1 }

</bundles_post_ra>
